<compile_context>
chip_gen: v6e
topology: v6e:2x2x1
jax: 0.10.0
libtpu: 0.0.40
codegen_flags: <defaults>
</compile_context>

<pallas_src>
import math
import jax
import jax.numpy as jnp
from jax.experimental import pallas as pl
from jax.experimental.pallas import tpu as pltpu

EPS = 1e-5


def _layer_norm(h, gamma, beta):
    # h: (rows, E); gamma/beta: (1, E); f32 math
    mu = jnp.mean(h, axis=-1, keepdims=True)
    var = jnp.mean((h - mu) ** 2, axis=-1, keepdims=True)
    return (h - mu) * jax.lax.rsqrt(var + EPS) * gamma + beta


def _gelu_tanh(h):
    # TODO(synk): reference `layers.MLP` activation unknown; using tanh-approx GELU.
    c = math.sqrt(2.0 / math.pi)
    return 0.5 * h * (1.0 + jnp.tanh(c * (h + 0.044715 * h * h * h)))


# --------------------------------------------------------------------------------------
# Pass 1: dropout1(id) -> LayerNorm1 -> fused full-width QKV projection (once per token).
# --------------------------------------------------------------------------------------
def _qkv_proj_kernel(x_ref, g1_ref, be1_ref, wqkv_ref, bqkv_ref,
                     q_ref, k_ref, v_ref):
    E = x_ref.shape[-1]
    x = x_ref[...]                                                   # (ts, E)  f32
    h1 = _layer_norm(x, g1_ref[...], be1_ref[...])                   # f32
    # One (ts,E)x(E,3E) MXU matmul, bf16 operands, f32 accumulation. Wq/bq already carry
    # the 1/sqrt(dh) attention scale (folded in the wrapper).
    qkv = jnp.dot(h1.astype(jnp.bfloat16), wqkv_ref[...],
                  preferred_element_type=jnp.float32) + bqkv_ref[...]  # (ts, 3E) f32
    q_ref[...] = qkv[:, :E].astype(q_ref.dtype)
    k_ref[...] = qkv[:, E:2 * E].astype(k_ref.dtype)
    v_ref[...] = qkv[:, 2 * E:].astype(v_ref.dtype)


# --------------------------------------------------------------------------------------
# Pass 2: flash attention (online softmax over K/V tiles) + out-proj + residual
#         + LayerNorm2 + MLP + residual, for one (batch, q-tile).
# --------------------------------------------------------------------------------------
def _attn_mlp_kernel(q_ref, k_ref, v_ref, xq_ref,
                     wo_ref, bo_ref, g2_ref, be2_ref,
                     w1_ref, b1_ref, w2_ref, b2_ref,
                     out_ref,
                     m_sc, l_sc, acc_sc):
    ki = pl.program_id(2)
    NH = q_ref.shape[0]
    bf16 = jnp.bfloat16

    @pl.when(ki == 0)
    def _():
        m_sc[...] = jnp.full_like(m_sc, -jnp.inf)
        l_sc[...] = jnp.zeros_like(l_sc)
        acc_sc[...] = jnp.zeros_like(acc_sc)

    # ---- online-softmax update for this K/V tile (q is pre-scaled by 1/sqrt(dh)) ----
    s = jnp.einsum('hqd,hkd->hqk', q_ref[...], k_ref[...],
                   preferred_element_type=jnp.float32)               # (NH, TQ, TK) f32
    m_prev = m_sc[...]
    m_new = jnp.maximum(m_prev, jnp.max(s, axis=-1, keepdims=True))
    alpha = jnp.exp(m_prev - m_new)
    p = jnp.exp(s - m_new)
    l_sc[...] = alpha * l_sc[...] + jnp.sum(p, axis=-1, keepdims=True)
    acc_sc[...] = alpha * acc_sc[...] + jnp.einsum(
        'hqk,hkd->hqd', p.astype(bf16), v_ref[...],
        preferred_element_type=jnp.float32)                          # (NH, TQ, dh) f32
    m_sc[...] = m_new

    # ---- epilogue (only at the last K tile): out-proj, residuals, LN2, MLP ----------
    @pl.when(ki == pl.num_programs(2) - 1)
    def _():
        ctx = acc_sc[...] * pl.reciprocal(l_sc[...], approx=True)    # (NH, TQ, dh) f32
        # Fold heads back onto lanes: (NH, TQ, dh) -> (TQ, E). The head reduction of the
        # output projection then runs as a single full-width (K=E) MXU matmul -- no
        # (NH, TQ, E) f32 intermediate and no VPU sum over heads.
        ctx_b = ctx.astype(bf16)
        ctx2 = jnp.concatenate([ctx_b[h] for h in range(NH)], axis=-1)  # (TQ, E) bf16
        msa = jnp.dot(ctx2, wo_ref[...],
                      preferred_element_type=jnp.float32) + bo_ref[...]

        # dropout2 = identity (eval); first residual
        add = xq_ref[...] + msa                                      # (TQ, E) f32

        # LayerNorm2 + MLP (dropout3 = identity)
        h2 = _layer_norm(add, g2_ref[...], be2_ref[...])
        hid = jnp.dot(h2.astype(bf16), w1_ref[...],
                      preferred_element_type=jnp.float32) + b1_ref[...]
        hid = _gelu_tanh(hid)
        mlp = jnp.dot(hid.astype(bf16), w2_ref[...],
                      preferred_element_type=jnp.float32) + b2_ref[...]

        # second residual
        out_ref[...] = (add + mlp).astype(out_ref.dtype)


# --------------------------------------------------------------------------------------
# Wrapper
# --------------------------------------------------------------------------------------
def _const_spec(shape, weight_buffers):
    index_map = lambda *_: (0,) * len(shape)
    if weight_buffers is None:
        return pl.BlockSpec(shape, index_map)
    # Constant-index (weight) operands only ever need one live buffer; single-buffering
    # halves their VMEM footprint (matters on v7x's 64 MiB/TC).
    return pl.BlockSpec(shape, index_map, pipeline_mode=pl.Buffered(weight_buffers))


def _default_vmem_limit():
    # ~3/4 of physical VMEM, capped: ~96 MiB on 128 MiB parts (v5e/v6e), ~48 MiB on v7x.
    try:
        cap = pltpu.get_tpu_info().vmem_capacity_bytes
    except Exception:
        cap = 128 * 1024 * 1024
    return min((cap * 3) // 4, 100 * 1024 * 1024)


def _transformer_block_impl(x, params, num_heads, tq, tk, weight_buffers):
    B, S, E = x.shape
    assert E % num_heads == 0, "emb_dim must be divisible by num_heads"
    dh = E // num_heads
    H = params["w1"].shape[1]
    f32, bf16 = jnp.float32, jnp.bfloat16

    tq = min(tq, S)
    tk = min(tk, S)
    assert S % tq == 0 and S % tk == 0, "seq len must be a multiple of the tile sizes"
    nq, nk = S // tq, S // tk
    ts = tq                      # sequence tile for the QKV-projection pass
    ns = S // ts

    # Fold the 1/sqrt(dh) attention scale into Wq/bq (VPU work shrinks by ~S/dh) and
    # fuse the three projections into one full-width (E, 3E) weight.
    scale = 1.0 / math.sqrt(dh)
    wqkv = jnp.concatenate(
        [params["wq"] * scale, params["wk"], params["wv"]], axis=1).astype(bf16)
    bqkv = jnp.concatenate(
        [params["bq"] * scale, params["bk"], params["bv"]], axis=1).astype(f32)

    vmem_limit = _default_vmem_limit()

    # ---- pass 1: LN1 + fused QKV projection, computed once per token -----------------
    qkv_call = pl.pallas_call(
        _qkv_proj_kernel,
        out_shape=(jax.ShapeDtypeStruct((B, S, E), bf16),) * 3,
        grid_spec=pltpu.PrefetchScalarGridSpec(
            num_scalar_prefetch=0,
            grid=(B, ns),
            in_specs=[
                pl.BlockSpec((None, ts, E), lambda b, s: (b, s, 0)),     # x tile
                _const_spec((1, E), weight_buffers),                     # ln1 gamma
                _const_spec((1, E), weight_buffers),                     # ln1 beta
                _const_spec((E, 3 * E), weight_buffers),                 # Wqkv
                _const_spec((1, 3 * E), weight_buffers),                 # bqkv
            ],
            out_specs=[pl.BlockSpec((None, ts, E), lambda b, s: (b, s, 0))] * 3,
        ),
        compiler_params=pltpu.CompilerParams(
            dimension_semantics=("parallel", "parallel"),
            vmem_limit_bytes=vmem_limit,
        ),
    )
    q, k, v = qkv_call(x, params["g1"], params["be1"], wqkv, bqkv)

    # Layout plumbing outside the kernel: heads become a leading batch axis.
    def split_heads(t):          # (B, S, E) -> (B, NH, S, dh), bf16
        return jnp.transpose(t.reshape(B, S, num_heads, dh), (0, 2, 1, 3))

    qh, kh, vh = split_heads(q), split_heads(k), split_heads(v)

    wo = params["wo"].astype(bf16)
    w1 = params["w1"].astype(bf16)
    w2 = params["w2"].astype(bf16)

    q_spec = pl.BlockSpec((None, num_heads, tq, dh), lambda b, qi, ki: (b, 0, qi, 0))
    kv_spec = pl.BlockSpec((None, num_heads, tk, dh), lambda b, qi, ki: (b, 0, ki, 0))

    # ---- pass 2: flash attention + out-proj + residual + LN2 + MLP + residual --------
    attn_call = pl.pallas_call(
        _attn_mlp_kernel,
        out_shape=jax.ShapeDtypeStruct((B, S, E), f32),
        grid_spec=pltpu.PrefetchScalarGridSpec(
            num_scalar_prefetch=0,
            grid=(B, nq, nk),
            in_specs=[
                q_spec,                                                   # q  (pre-scaled)
                kv_spec,                                                  # k
                kv_spec,                                                  # v
                pl.BlockSpec((None, tq, E), lambda b, qi, ki: (b, qi, 0)),  # x (residual)
                _const_spec((E, E), weight_buffers),                      # Wo
                _const_spec((1, E), weight_buffers),                      # bo
                _const_spec((1, E), weight_buffers),                      # ln2 gamma
                _const_spec((1, E), weight_buffers),                      # ln2 beta
                _const_spec((E, H), weight_buffers),                      # W1
                _const_spec((1, H), weight_buffers),                      # b1
                _const_spec((H, E), weight_buffers),                      # W2
                _const_spec((1, E), weight_buffers),                      # b2
            ],
            out_specs=pl.BlockSpec((None, tq, E), lambda b, qi, ki: (b, qi, 0)),
            scratch_shapes=[
                pltpu.VMEM((num_heads, tq, 1), f32),     # running max  m
                pltpu.VMEM((num_heads, tq, 1), f32),     # running sum  l
                pltpu.VMEM((num_heads, tq, dh), f32),    # running ctx  acc
            ],
        ),
        compiler_params=pltpu.CompilerParams(
            dimension_semantics=("parallel", "parallel", "arbitrary"),
            vmem_limit_bytes=vmem_limit,
        ),
    )
    out = attn_call(
        qh, kh, vh, x,
        wo, params["bo"].astype(f32),
        params["g2"], params["be2"],
        w1, params["b1"].astype(f32), w2, params["b2"].astype(f32),
    )
    return jax.block_until_ready(out)


def transformer_block(x, params, num_heads, tq=256, tk=512):
    try:
        # Single-buffered constant weight specs (pl.Buffered(1)).
        return _transformer_block_impl(x, params, num_heads, tq, tk, weight_buffers=1)
    except Exception:
        # pl.Buffered single-buffering unavailable on this jax/libtpu combination;
        # fall back to default double-buffered weight specs (identical results).
        return _transformer_block_impl(x, params, num_heads, tq, tk, weight_buffers=None)


def init_params(key, emb_dim, hidden_dim):
    keys = jax.random.split(key, 8)

    def lin(k, fan_in, fan_out):
        bound = math.sqrt(6.0 / (fan_in + fan_out))
        return jax.random.uniform(k, (fan_in, fan_out), jnp.float32, -bound, bound)

    E, H = emb_dim, hidden_dim
    return {
        "g1": jnp.ones((1, E), jnp.float32),
        "be1": jnp.zeros((1, E), jnp.float32),
        "wq": lin(keys[0], E, E), "bq": jnp.zeros((1, E), jnp.float32),
        "wk": lin(keys[1], E, E), "bk": jnp.zeros((1, E), jnp.float32),
        "wv": lin(keys[2], E, E), "bv": jnp.zeros((1, E), jnp.float32),
        "wo": lin(keys[3], E, E), "bo": jnp.zeros((1, E), jnp.float32),
        "g2": jnp.ones((1, E), jnp.float32),
        "be2": jnp.zeros((1, E), jnp.float32),
        "w1": lin(keys[4], E, H), "b1": jnp.zeros((1, H), jnp.float32),
        "w2": lin(keys[5], H, E), "b2": jnp.zeros((1, E), jnp.float32),
    }


if __name__ == "__main__":
    # Small shapes consistent with the module's forward: (batch, seq, emb_dim).
    # E=128 keeps stores lane-dense; tq=tk=8 exercises the (B, nq, nk) = (2,2,2) grid.
    B, S, E, H, NH = 2, 16, 128, 256, 4

    key = jax.random.PRNGKey(0)
    kx, kp = jax.random.split(key)
    x = jax.random.normal(kx, (B, S, E), jnp.float32)
    params = init_params(kp, E, H)

    out = transformer_block(x, params, num_heads=NH, tq=8, tk=8)
    jax.block_until_ready(out)
    assert out.shape == (B, S, E)
    print("KERNEL_OK")
</pallas_src>

<mosaic_0001>
module attributes {stable_mosaic.version = 11 : i64} {
  func.func @_qkv_proj_kernel(%arg0: i32, %arg1: i32, %arg2: memref<1x8x128xf32, #tpu.memory_space<vmem>>, %arg3: memref<1x128xf32, #tpu.memory_space<vmem>>, %arg4: memref<1x128xf32, #tpu.memory_space<vmem>>, %arg5: memref<128x384xbf16, #tpu.memory_space<vmem>>, %arg6: memref<1x384xf32, #tpu.memory_space<vmem>>, %arg7: memref<1x8x128xbf16, #tpu.memory_space<vmem>>, %arg8: memref<1x8x128xbf16, #tpu.memory_space<vmem>>, %arg9: memref<1x8x128xbf16, #tpu.memory_space<vmem>>) attributes {dimension_semantics = [#tpu.dimension_semantics<parallel>, #tpu.dimension_semantics<parallel>], iteration_bounds = array<i64: 2, 2>, scalar_prefetch = 0 : i64, scratch_operands = 0 : i64, tpu.core_type = #tpu.core_type<tc>, window_params = [{transform_indices = @transform_0, window_bounds = array<i64: 1, 8, 128>}, {pipeline_mode = #tpu.pipeline_mode<synchronous>, transform_indices = @transform_1, window_bounds = array<i64: 1, 128>}, {pipeline_mode = #tpu.pipeline_mode<synchronous>, transform_indices = @transform_2, window_bounds = array<i64: 1, 128>}, {pipeline_mode = #tpu.pipeline_mode<synchronous>, transform_indices = @transform_3, window_bounds = array<i64: 128, 384>}, {pipeline_mode = #tpu.pipeline_mode<synchronous>, transform_indices = @transform_4, window_bounds = array<i64: 1, 384>}, {transform_indices = @transform_5, window_bounds = array<i64: 1, 8, 128>}, {transform_indices = @transform_6, window_bounds = array<i64: 1, 8, 128>}, {transform_indices = @transform_7, window_bounds = array<i64: 1, 8, 128>}]} {
    %c0 = arith.constant 0 : index
    %c0_0 = arith.constant 0 : index
    %c0_1 = arith.constant 0 : index
    %0 = vector.load %arg2[%c0, %c0_0, %c0_1] : memref<1x8x128xf32, #tpu.memory_space<vmem>>, vector<1x8x128xf32>
    %1 = vector.shape_cast %0 : vector<1x8x128xf32> to vector<8x128xf32>
    %c0_2 = arith.constant 0 : index
    %c0_3 = arith.constant 0 : index
    %2 = vector.load %arg3[%c0_2, %c0_3] : memref<1x128xf32, #tpu.memory_space<vmem>>, vector<1x128xf32>
    %c0_4 = arith.constant 0 : index
    %c0_5 = arith.constant 0 : index
    %3 = vector.load %arg4[%c0_4, %c0_5] : memref<1x128xf32, #tpu.memory_space<vmem>>, vector<1x128xf32>
    %cst = arith.constant dense<0.000000e+00> : vector<8xf32>
    %4 = vector.multi_reduction <add>, %1, %cst [1] : vector<8x128xf32> to vector<8xf32>
    %5 = vector.shape_cast %4 : vector<8xf32> to vector<8x1xf32>
    %cst_6 = arith.constant 1.280000e+02 : f32
    %6 = vector.broadcast %cst_6 : f32 to vector<8x1xf32>
    %7 = arith.divf %5, %6 : vector<8x1xf32>
    %8 = vector.broadcast %7 : vector<8x1xf32> to vector<8x128xf32>
    %9 = arith.subf %1, %8 : vector<8x128xf32>
    %10 = arith.mulf %9, %9 : vector<8x128xf32>
    %cst_7 = arith.constant dense<0.000000e+00> : vector<8xf32>
    %11 = vector.multi_reduction <add>, %10, %cst_7 [1] : vector<8x128xf32> to vector<8xf32>
    %12 = vector.shape_cast %11 : vector<8xf32> to vector<8x1xf32>
    %cst_8 = arith.constant 1.280000e+02 : f32
    %13 = vector.broadcast %cst_8 : f32 to vector<8x1xf32>
    %14 = arith.divf %12, %13 : vector<8x1xf32>
    %15 = vector.broadcast %7 : vector<8x1xf32> to vector<8x128xf32>
    %16 = arith.subf %1, %15 : vector<8x128xf32>
    %cst_9 = arith.constant 9.99999974E-6 : f32
    %17 = vector.broadcast %cst_9 : f32 to vector<8x1xf32>
    %18 = arith.addf %14, %17 : vector<8x1xf32>
    %19 = math.rsqrt %18 : vector<8x1xf32>
    %20 = vector.broadcast %19 : vector<8x1xf32> to vector<8x128xf32>
    %21 = arith.mulf %16, %20 : vector<8x128xf32>
    %22 = vector.broadcast %2 : vector<1x128xf32> to vector<8x128xf32>
    %23 = arith.mulf %21, %22 : vector<8x128xf32>
    %24 = vector.broadcast %3 : vector<1x128xf32> to vector<8x128xf32>
    %25 = arith.addf %23, %24 : vector<8x128xf32>
    %26 = arith.truncf %25 : vector<8x128xf32> to vector<8x128xbf16>
    %c0_10 = arith.constant 0 : index
    %c0_11 = arith.constant 0 : index
    %27 = vector.load %arg5[%c0_10, %c0_11] : memref<128x384xbf16, #tpu.memory_space<vmem>>, vector<128x384xbf16>
    %cst_12 = arith.constant dense<0.000000e+00> : vector<8x384xf32>
    %28 = tpu.matmul %26, %27, %cst_12 {dimension_numbers = #tpu.dot_dimension_numbers<[1], [0], [0], [1], [0, 0, 1, 1], [], []>} : vector<8x128xbf16>, vector<128x384xbf16>, vector<8x384xf32> -> vector<8x384xf32>
    %c0_13 = arith.constant 0 : index
    %c0_14 = arith.constant 0 : index
    %29 = vector.load %arg6[%c0_13, %c0_14] : memref<1x384xf32, #tpu.memory_space<vmem>>, vector<1x384xf32>
    %30 = vector.broadcast %29 : vector<1x384xf32> to vector<8x384xf32>
    %31 = arith.addf %28, %30 : vector<8x384xf32>
    %32 = vector.extract_strided_slice %31 {offsets = [0, 0], sizes = [8, 128], strides = [1, 1]} : vector<8x384xf32> to vector<8x128xf32>
    %33 = arith.truncf %32 : vector<8x128xf32> to vector<8x128xbf16>
    %c0_15 = arith.constant 0 : index
    %c0_16 = arith.constant 0 : index
    %c0_17 = arith.constant 0 : index
    %34 = vector.load %arg7[%c0_15, %c0_16, %c0_17] : memref<1x8x128xbf16, #tpu.memory_space<vmem>>, vector<1x8x128xbf16>
    %35 = vector.shape_cast %34 : vector<1x8x128xbf16> to vector<8x128xbf16>
    %36 = vector.shape_cast %33 : vector<8x128xbf16> to vector<1x8x128xbf16>
    tpu.vector_store %arg7[%c0_15, %c0_16, %c0_17], %36 {strides = array<i32>} : memref<1x8x128xbf16, #tpu.memory_space<vmem>>, vector<1x8x128xbf16>,
    %37 = vector.extract_strided_slice %31 {offsets = [0, 128], sizes = [8, 128], strides = [1, 1]} : vector<8x384xf32> to vector<8x128xf32>
    %38 = arith.truncf %37 : vector<8x128xf32> to vector<8x128xbf16>
    %c0_18 = arith.constant 0 : index
    %c0_19 = arith.constant 0 : index
    %c0_20 = arith.constant 0 : index
    %39 = vector.load %arg8[%c0_18, %c0_19, %c0_20] : memref<1x8x128xbf16, #tpu.memory_space<vmem>>, vector<1x8x128xbf16>
    %40 = vector.shape_cast %39 : vector<1x8x128xbf16> to vector<8x128xbf16>
    %41 = vector.shape_cast %38 : vector<8x128xbf16> to vector<1x8x128xbf16>
    tpu.vector_store %arg8[%c0_18, %c0_19, %c0_20], %41 {strides = array<i32>} : memref<1x8x128xbf16, #tpu.memory_space<vmem>>, vector<1x8x128xbf16>,
    %42 = vector.extract_strided_slice %31 {offsets = [0, 256], sizes = [8, 128], strides = [1, 1]} : vector<8x384xf32> to vector<8x128xf32>
    %43 = arith.truncf %42 : vector<8x128xf32> to vector<8x128xbf16>
    %c0_21 = arith.constant 0 : index
    %c0_22 = arith.constant 0 : index
    %c0_23 = arith.constant 0 : index
    %44 = vector.load %arg9[%c0_21, %c0_22, %c0_23] : memref<1x8x128xbf16, #tpu.memory_space<vmem>>, vector<1x8x128xbf16>
    %45 = vector.shape_cast %44 : vector<1x8x128xbf16> to vector<8x128xbf16>
    %46 = vector.shape_cast %43 : vector<8x128xbf16> to vector<1x8x128xbf16>
    tpu.vector_store %arg9[%c0_21, %c0_22, %c0_23], %46 {strides = array<i32>} : memref<1x8x128xbf16, #tpu.memory_space<vmem>>, vector<1x8x128xbf16>,
    return
  }
  func.func @transform_0(%arg0: i32, %arg1: i32) -> (i32, i32, i32) {
    %c0_i32 = arith.constant 0 : i32
    %c0_i32_0 = arith.constant 0 : i32
    return %arg0, %arg1, %c0_i32 : i32, i32, i32
  }
  func.func @transform_1(%arg0: i32, %arg1: i32) -> (i32, i32) {
    %c0_i32 = arith.constant 0 : i32
    %c0_i32_0 = arith.constant 0 : i32
    %c0_i32_1 = arith.constant 0 : i32
    return %c0_i32, %c0_i32_0 : i32, i32
  }
  func.func @transform_2(%arg0: i32, %arg1: i32) -> (i32, i32) {
    %c0_i32 = arith.constant 0 : i32
    %c0_i32_0 = arith.constant 0 : i32
    %c0_i32_1 = arith.constant 0 : i32
    return %c0_i32, %c0_i32_0 : i32, i32
  }
  func.func @transform_3(%arg0: i32, %arg1: i32) -> (i32, i32) {
    %c0_i32 = arith.constant 0 : i32
    %c0_i32_0 = arith.constant 0 : i32
    %c0_i32_1 = arith.constant 0 : i32
    return %c0_i32, %c0_i32_0 : i32, i32
  }
  func.func @transform_4(%arg0: i32, %arg1: i32) -> (i32, i32) {
    %c0_i32 = arith.constant 0 : i32
    %c0_i32_0 = arith.constant 0 : i32
    %c0_i32_1 = arith.constant 0 : i32
    return %c0_i32, %c0_i32_0 : i32, i32
  }
  func.func @transform_5(%arg0: i32, %arg1: i32) -> (i32, i32, i32) {
    %c0_i32 = arith.constant 0 : i32
    %c0_i32_0 = arith.constant 0 : i32
    return %arg0, %arg1, %c0_i32 : i32, i32, i32
  }
  func.func @transform_6(%arg0: i32, %arg1: i32) -> (i32, i32, i32) {
    %c0_i32 = arith.constant 0 : i32
    %c0_i32_0 = arith.constant 0 : i32
    return %arg0, %arg1, %c0_i32 : i32, i32, i32
  }
  func.func @transform_7(%arg0: i32, %arg1: i32) -> (i32, i32, i32) {
    %c0_i32 = arith.constant 0 : i32
    %c0_i32_0 = arith.constant 0 : i32
    return %arg0, %arg1, %c0_i32 : i32, i32, i32
  }
}

module attributes {stable_mosaic.version = 11 : i64} {
  func.func @_qkv_proj_kernel(%arg0: i32, %arg1: i32, %arg2: memref<1x8x128xf32, #tpu.memory_space<vmem>>, %arg3: memref<1x128xf32, #tpu.memory_space<vmem>>, %arg4: memref<1x128xf32, #tpu.memory_space<vmem>>, %arg5: memref<128x384xbf16, #tpu.memory_space<vmem>>, %arg6: memref<1x384xf32, #tpu.memory_space<vmem>>, %arg7: memref<1x8x128xbf16, #tpu.memory_space<vmem>>, %arg8: memref<1x8x128xbf16, #tpu.memory_space<vmem>>, %arg9: memref<1x8x128xbf16, #tpu.memory_space<vmem>>) attributes {dimension_semantics = [#tpu.dimension_semantics<parallel>, #tpu.dimension_semantics<parallel>], iteration_bounds = array<i64: 2, 2>, scalar_prefetch = 0 : i64, scratch_operands = 0 : i64, tpu.core_type = #tpu.core_type<tc>, window_params = [{transform_indices = @transform_0, window_bounds = array<i64: 1, 8, 128>}, {pipeline_mode = #tpu.pipeline_mode<synchronous>, transform_indices = @transform_1, window_bounds = array<i64: 1, 128>}, {pipeline_mode = #tpu.pipeline_mode<synchronous>, transform_indices = @transform_2, window_bounds = array<i64: 1, 128>}, {pipeline_mode = #tpu.pipeline_mode<synchronous>, transform_indices = @transform_3, window_bounds = array<i64: 128, 384>}, {pipeline_mode = #tpu.pipeline_mode<synchronous>, transform_indices = @transform_4, window_bounds = array<i64: 1, 384>}, {transform_indices = @transform_5, window_bounds = array<i64: 1, 8, 128>}, {transform_indices = @transform_6, window_bounds = array<i64: 1, 8, 128>}, {transform_indices = @transform_7, window_bounds = array<i64: 1, 8, 128>}]} {
    %c0 = arith.constant 0 : index
    %c0_0 = arith.constant 0 : index
    %c0_1 = arith.constant 0 : index
    %0 = vector.load %arg2[%c0, %c0_0, %c0_1] : memref<1x8x128xf32, #tpu.memory_space<vmem>>, vector<1x8x128xf32>
    %1 = vector.shape_cast %0 : vector<1x8x128xf32> to vector<8x128xf32>
    %c0_2 = arith.constant 0 : index
    %c0_3 = arith.constant 0 : index
    %2 = vector.load %arg3[%c0_2, %c0_3] : memref<1x128xf32, #tpu.memory_space<vmem>>, vector<1x128xf32>
    %c0_4 = arith.constant 0 : index
    %c0_5 = arith.constant 0 : index
    %3 = vector.load %arg4[%c0_4, %c0_5] : memref<1x128xf32, #tpu.memory_space<vmem>>, vector<1x128xf32>
    %cst = arith.constant dense<0.000000e+00> : vector<8xf32>
    %4 = vector.multi_reduction <add>, %1, %cst [1] : vector<8x128xf32> to vector<8xf32>
    %5 = vector.shape_cast %4 : vector<8xf32> to vector<8x1xf32>
    %cst_6 = arith.constant 1.280000e+02 : f32
    %6 = vector.broadcast %cst_6 : f32 to vector<8x1xf32>
    %7 = arith.divf %5, %6 : vector<8x1xf32>
    %8 = vector.broadcast %7 : vector<8x1xf32> to vector<8x128xf32>
    %9 = arith.subf %1, %8 : vector<8x128xf32>
    %10 = arith.mulf %9, %9 : vector<8x128xf32>
    %cst_7 = arith.constant dense<0.000000e+00> : vector<8xf32>
    %11 = vector.multi_reduction <add>, %10, %cst_7 [1] : vector<8x128xf32> to vector<8xf32>
    %12 = vector.shape_cast %11 : vector<8xf32> to vector<8x1xf32>
    %cst_8 = arith.constant 1.280000e+02 : f32
    %13 = vector.broadcast %cst_8 : f32 to vector<8x1xf32>
    %14 = arith.divf %12, %13 : vector<8x1xf32>
    %15 = vector.broadcast %7 : vector<8x1xf32> to vector<8x128xf32>
    %16 = arith.subf %1, %15 : vector<8x128xf32>
    %cst_9 = arith.constant 9.99999974E-6 : f32
    %17 = vector.broadcast %cst_9 : f32 to vector<8x1xf32>
    %18 = arith.addf %14, %17 : vector<8x1xf32>
    %19 = math.rsqrt %18 : vector<8x1xf32>
    %20 = vector.broadcast %19 : vector<8x1xf32> to vector<8x128xf32>
    %21 = arith.mulf %16, %20 : vector<8x128xf32>
    %22 = vector.broadcast %2 : vector<1x128xf32> to vector<8x128xf32>
    %23 = arith.mulf %21, %22 : vector<8x128xf32>
    %24 = vector.broadcast %3 : vector<1x128xf32> to vector<8x128xf32>
    %25 = arith.addf %23, %24 : vector<8x128xf32>
    %26 = arith.truncf %25 : vector<8x128xf32> to vector<8x128xbf16>
    %c0_10 = arith.constant 0 : index
    %c0_11 = arith.constant 0 : index
    %27 = vector.load %arg5[%c0_10, %c0_11] : memref<128x384xbf16, #tpu.memory_space<vmem>>, vector<128x384xbf16>
    %cst_12 = arith.constant dense<0.000000e+00> : vector<8x384xf32>
    %28 = tpu.matmul %26, %27, %cst_12 {dimension_numbers = #tpu.dot_dimension_numbers<[1], [0], [0], [1], [0, 0, 1, 1], [], []>} : vector<8x128xbf16>, vector<128x384xbf16>, vector<8x384xf32> -> vector<8x384xf32>
    %c0_13 = arith.constant 0 : index
    %c0_14 = arith.constant 0 : index
    %29 = vector.load %arg6[%c0_13, %c0_14] : memref<1x384xf32, #tpu.memory_space<vmem>>, vector<1x384xf32>
    %30 = vector.broadcast %29 : vector<1x384xf32> to vector<8x384xf32>
    %31 = arith.addf %28, %30 : vector<8x384xf32>
    %32 = vector.extract_strided_slice %31 {offsets = [0, 0], sizes = [8, 128], strides = [1, 1]} : vector<8x384xf32> to vector<8x128xf32>
    %33 = arith.truncf %32 : vector<8x128xf32> to vector<8x128xbf16>
    %c0_15 = arith.constant 0 : index
    %c0_16 = arith.constant 0 : index
    %c0_17 = arith.constant 0 : index
    %34 = vector.load %arg7[%c0_15, %c0_16, %c0_17] : memref<1x8x128xbf16, #tpu.memory_space<vmem>>, vector<1x8x128xbf16>
    %35 = vector.shape_cast %34 : vector<1x8x128xbf16> to vector<8x128xbf16>
    %36 = vector.shape_cast %33 : vector<8x128xbf16> to vector<1x8x128xbf16>
    tpu.vector_store %arg7[%c0_15, %c0_16, %c0_17], %36 {strides = array<i32>} : memref<1x8x128xbf16, #tpu.memory_space<vmem>>, vector<1x8x128xbf16>,
    %37 = vector.extract_strided_slice %31 {offsets = [0, 128], sizes = [8, 128], strides = [1, 1]} : vector<8x384xf32> to vector<8x128xf32>
    %38 = arith.truncf %37 : vector<8x128xf32> to vector<8x128xbf16>
    %c0_18 = arith.constant 0 : index
    %c0_19 = arith.constant 0 : index
    %c0_20 = arith.constant 0 : index
    %39 = vector.load %arg8[%c0_18, %c0_19, %c0_20] : memref<1x8x128xbf16, #tpu.memory_space<vmem>>, vector<1x8x128xbf16>
    %40 = vector.shape_cast %39 : vector<1x8x128xbf16> to vector<8x128xbf16>
    %41 = vector.shape_cast %38 : vector<8x128xbf16> to vector<1x8x128xbf16>
    tpu.vector_store %arg8[%c0_18, %c0_19, %c0_20], %41 {strides = array<i32>} : memref<1x8x128xbf16, #tpu.memory_space<vmem>>, vector<1x8x128xbf16>,
    %42 = vector.extract_strided_slice %31 {offsets = [0, 256], sizes = [8, 128], strides = [1, 1]} : vector<8x384xf32> to vector<8x128xf32>
    %43 = arith.truncf %42 : vector<8x128xf32> to vector<8x128xbf16>
    %c0_21 = arith.constant 0 : index
    %c0_22 = arith.constant 0 : index
    %c0_23 = arith.constant 0 : index
    %44 = vector.load %arg9[%c0_21, %c0_22, %c0_23] : memref<1x8x128xbf16, #tpu.memory_space<vmem>>, vector<1x8x128xbf16>
    %45 = vector.shape_cast %44 : vector<1x8x128xbf16> to vector<8x128xbf16>
    %46 = vector.shape_cast %43 : vector<8x128xbf16> to vector<1x8x128xbf16>
    tpu.vector_store %arg9[%c0_21, %c0_22, %c0_23], %46 {strides = array<i32>} : memref<1x8x128xbf16, #tpu.memory_space<vmem>>, vector<1x8x128xbf16>,
    return
  }
  func.func @transform_0(%arg0: i32, %arg1: i32) -> (i32, i32, i32) {
    %c0_i32 = arith.constant 0 : i32
    %c0_i32_0 = arith.constant 0 : i32
    return %arg0, %arg1, %c0_i32 : i32, i32, i32
  }
  func.func @transform_1(%arg0: i32, %arg1: i32) -> (i32, i32) {
    %c0_i32 = arith.constant 0 : i32
    %c0_i32_0 = arith.constant 0 : i32
    %c0_i32_1 = arith.constant 0 : i32
    return %c0_i32, %c0_i32_0 : i32, i32
  }
  func.func @transform_2(%arg0: i32, %arg1: i32) -> (i32, i32) {
    %c0_i32 = arith.constant 0 : i32
    %c0_i32_0 = arith.constant 0 : i32
    %c0_i32_1 = arith.constant 0 : i32
    return %c0_i32, %c0_i32_0 : i32, i32
  }
  func.func @transform_3(%arg0: i32, %arg1: i32) -> (i32, i32) {
    %c0_i32 = arith.constant 0 : i32
    %c0_i32_0 = arith.constant 0 : i32
    %c0_i32_1 = arith.constant 0 : i32
    return %c0_i32, %c0_i32_0 : i32, i32
  }
  func.func @transform_4(%arg0: i32, %arg1: i32) -> (i32, i32) {
    %c0_i32 = arith.constant 0 : i32
    %c0_i32_0 = arith.constant 0 : i32
    %c0_i32_1 = arith.constant 0 : i32
    return %c0_i32, %c0_i32_0 : i32, i32
  }
  func.func @transform_5(%arg0: i32, %arg1: i32) -> (i32, i32, i32) {
    %c0_i32 = arith.constant 0 : i32
    %c0_i32_0 = arith.constant 0 : i32
    return %arg0, %arg1, %c0_i32 : i32, i32, i32
  }
  func.func @transform_6(%arg0: i32, %arg1: i32) -> (i32, i32, i32) {
    %c0_i32 = arith.constant 0 : i32
    %c0_i32_0 = arith.constant 0 : i32
    return %arg0, %arg1, %c0_i32 : i32, i32, i32
  }
  func.func @transform_7(%arg0: i32, %arg1: i32) -> (i32, i32, i32) {
    %c0_i32 = arith.constant 0 : i32
    %c0_i32_0 = arith.constant 0 : i32
    return %arg0, %arg1, %c0_i32 : i32, i32, i32
  }
}

</mosaic_0001>

<bundles_post_ra>
// kernel: tpu_custom_call.1
= control target key start
LH: loop header
LB: loop body
LE: loop exit
PB: predicated region body
PF: predicated region fallthrough
CT: control target
= control target key end

     0   :  { %s1615_s0 = inlined_call_operand.hbm [shape: f32[2,16,128], index: 0, kind: input, shape index: {}]   ;;  %s1616_s1 = inlined_call_operand.vmem [shape: f32[1,128], index: 1, kind: input, shape index: {}]   ;;  %s1617_s2 = inlined_call_operand.vmem [shape: f32[1,128], index: 2, kind: input, shape index: {}]   ;;  %s1618_s3 = inlined_call_operand.hbm [shape: bf16[128,384], index: 3, kind: input, shape index: {}]   ;;  %s1619_s4 = inlined_call_operand.vmem [shape: f32[1,384], index: 4, kind: input, shape index: {}]   ;;  %s1620_s5 = inlined_call_operand.hbm [shape: bf16[2,16,128], index: 5, kind: output, shape index: {0}]   ;;  %s1621_s6 = inlined_call_operand.hbm [shape: bf16[2,16,128], index: 6, kind: output, shape index: {1}]   ;;  %s1622_s7 = inlined_call_operand.hbm [shape: bf16[2,16,128], index: 7, kind: output, shape index: {2}]  }
   0x1   :  { %1634 = sst [smem:[#allocation19_spill]] %s1615_s0 }
   0x2   :  { %1635 = sst [smem:[#allocation20_spill]] %s1618_s3 }
   0x3   :  { %1636 = sst [smem:[#allocation21_spill]] %s1619_s4 }
   0x4   :  { %1637 = sst [smem:[#allocation22_spill]] %s1620_s5 }
   0x5   :  { %1638 = sst [smem:[#allocation23_spill]] %s1621_s6 }
   0x6   :  { %1639 = sst [smem:[#allocation24_spill]] %s1622_s7 }
   0x7   :  { %13 = vsyncpa [#allocation3], 0 }
   0x8   :  { %15 = vsyncpa [#allocation3 + $0x1], 0 }
   0x9   :  { %16 = vsyncpa [#allocation6], 0 }
   0xa   :  { %17 = vsyncpa [#allocation4], 0 }
   0xb   :  { %19 = vsyncpa [#allocation4 + $0x1], 0 }
   0xc   :  { %20 = vsyncpa [#allocation9], 0 }
   0xd   :  { %22 = vsyncpa [#allocation9 + $0x1], 0  ;;  %s1340_s24 = smov 0   ;;  %s1342_s25 = smov 0  }
   0xe   :  { %s1344_s26 = smov 0   ;;  %s1346_s27 = smov 0  }
   0xf   :  { %s1348_s28 = smov 0   ;;  %s1350_s29 = smov 0  }
  0x10   :  { %s1352_s30 = smov 0   ;;  %s1354_s8 = smov 0  }
  0x11 LB: > { %1640 = sst [smem:[#allocation15_spill]] %s1260_s24  ;;  %s1381_s9 = sadd.s32 4294967295, %s1288_s8   ;;  %s1288_s8 = sphi %s1354_s8, %s28_s8   ;;  %s1284_s30 = sphi %s1352_s30, %s1674_s30   ;;  %s1280_s29 = sphi %s1350_s29, %s1673_s29   ;;  %s1276_s28 = sphi %s1348_s28, %s1672_s28   ;;  %s1272_s27 = sphi %s1346_s27, %s1671_s27   ;;  %s1268_s26 = sphi %s1344_s26, %s1670_s26   ;;  %s1264_s25 = sphi %s1342_s25, %s1669_s25   ;;  %s1260_s24 = sphi %s1340_s24, %s1668_s24  }
  0x12   : > { %s1623_s10 = sadd.s32 4294967294, %s1288_s8   ;;  %p62_p0 = scmp.ne.s32.totalorder %s1264_s25, %s1260_s24 }
  0x13   : > { %p1632_p1 = scmp.eq.s32.totalorder %s1381_s9, 0  ;;  %p178_p3 = scmp.eq.s32.totalorder %s1623_s10, 3 }
  0x14   : > { %p862_p5 = scmp.ge.s32.totalorder %s1288_s8, 1  ;;  %p241_p7 = scmp.lt.s32.totalorder %s1288_s8, 5 }
  0x15   : > { %p1392_p4 = por %p1632_p1, %p62_p0  ;;  %p1397_p6 = por %p178_p3, %p62_p0 }
  0x16   : > { %p1402_p8 = pnand %p862_p5, %p241_p7  ;;  %s1290_s14 = smov [#allocation5]  }
  0x17   : > { %s1642_s12 = scalar_select %p1397_p6, 1, 0 }
  0x18   : > { %s259_s15 = sshll.u32 %s1290_s14, 4  ;;  %p952_p9 = pneg %p1402_p8  ;;  %s260_s15 = int_to_ptr.vmem [resolvable:$true] %s259_s15 }
  0x19   : > { %1643 = sst [smem:[#allocation16_spill]] %s1642_s12  ;;  %s1089_s16 = scalar_lea.vmem %s260_s15, 3072 }
  0x1a   : > { %p953_p10 = pnand %p952_p9, %p1632_p1  ;;  %p1090_p12 = scmp.ne.s32.totalorder %s260_s15, %s1089_s16 }
  0x1b   : > { %p1097_p3 = scmp.lt.s32.totalorder %s260_s15, %s260_s15  ;;  %p1098_p2 = scmp.lt.s32.totalorder %s1089_s16, %s1089_s16 }
  0x1c   : > { %p1080_p11 = pneg %p953_p10 }
  0x1d   : > { %p1099_p6 = por %p1098_p2, %p1097_p3 }
  0x1e   : > { %p1092_p13 = pnand %p1090_p12, %p1080_p11 }
  0x20   : > { %p1093_p0 = pneg %p1092_p13 }
  0x22   : > { %p1100_p5 = pnand %p1099_p6, %p1093_p0 }
  0x24   : > { %1103 = shalt.err (!%p1100_p5)
}
  0x25   : > { %s1291_s17 = smov 192   ;;  %s1292_s18 = smov 12  }
  0x26   : > { %s1645_s3 = sld [smem:[#allocation20_spill]]  ;;  %s37_s21 = sadd.s32 1, %s1280_s29 }
  0x27   : > { %p38_p2 = scmp.ge.s32.totalorder %s37_s21, 2  ;;  %s40_s22 = sadd.s32 1, %s1284_s30 }
  0x28   : > { %s49_s23 = sadd.s32 1, %s1268_s26  ;;  %p56_p6 = scmp.ne.s32.totalorder %s1268_s26, %s1264_s25 }
  0x29   : > { %s1676_s21 = smov (%p38_p2, %s37_s21), 0  ;;  %s1678_s22 = smov (!%p38_p2, %s40_s22), %s1284_s30 }
  0x2a   : > { %1646 = sst [smem:[#allocation17_spill]] %s1676_s21  ;;  %s45_s14 = ssub.s32 %s1280_s29, %s1676_s21 }
  0x2b   : > { %p57_p7 = scmp.eq.s32.totalorder %s1288_s8, 0  ;;  %p42_p9 = scmp.ge.s32.totalorder %s1678_s22, 2 }
  0x2c   : > { %955 = dma.hbm_to_vmem [thread:$0]  (!%p953_p10), %s1645_s3, 3072, %s260_s15, [#allocation6], %s1291_s17, %s1291_s17, %s1292_s18  }
  0x2d   : > { %p1647_p11 = scmp.eq.s32.totalorder %s1381_s9, 3  ;;  %p1430_p10 = por %p57_p7, %p56_p6 }
  0x2e   : > { %p971_p13 = scmp.lt.s32.totalorder %s1288_s8, 4  ;;  %s1680_s22 = smov (%p42_p9, %s1678_s22), 0 }
  0x2f   : > { %p1426_p12 = por %p1647_p11, %p56_p6  ;;  %s276_s17 = sand.u32 1, %s1268_s26  }
  0x30   : > { %s866_s18 = sshll.u32 %s1284_s30, 1  ;;  %s44_s19 = ssub.s32 %s1284_s30, %s1680_s22 }
  0x31   : > { %s1648_s16 = scalar_select %p1426_p12, 1, 0 }
  0x32   : > { %s46_s20 = sor.u32 %s45_s14, %s44_s19  ;;  %s865_s10 = sshll.u32 %s276_s17, 3 }
  0x33   : > { %1649 = sst [smem:[#allocation18_spill]] %s1648_s16  ;;  %p47_p0 = scmp.eq.s32.totalorder %s46_s20, 0 }
  0x34   : > { %s285_s3 = sadd.s32 %s1280_s29, %s866_s18  ;;  %s280_s21 = scalar_lea.vmem [#allocation2], %s865_s10 }
  0x35   : > { %s289_s12 = sshll.u32 %s280_s21, 4  ;;  %s867_s7 = sshll.u32 %s285_s3, 7  ;;  %s290_s12 = int_to_ptr.vmem [resolvable:$true] %s289_s12 }
  0x36   : > { %s1443_s24 = scalar_select %p47_p0, %s1268_s26, %s49_s23  }
  0x37   : > { %s1651_s0 = sld [smem:[#allocation19_spill]]  ;;  %p1452_p3 = pnand %p971_p13, %p1430_p10 }
  0x38   : > { %s277_s14 = scalar_lea.sflag [#allocation3], %s276_s17  ;;  %s1117_s10 = scalar_lea.vmem %s290_s12, 128 }
  0x39   : > { %p1106_p5 = pneg %p1452_p3  ;;  %p1118_p2 = scmp.ne.s32.totalorder %s290_s12, %s1117_s10 }
  0x3a   : > { %s1293_s3 = smov [#allocation2]  }
  0x3b   : > { %p1120_p6 = pnand %p1118_p2, %p1106_p5  ;;  %s1122_s21 = sshll.u32 %s1293_s3, 4  ;;  %s1123_s21 = int_to_ptr.vmem [resolvable:$false] %s1122_s21 }
  0x3c   : > { %s1124_s23 = scalar_lea.vmem %s1123_s21, 256  ;;  %p1125_p9 = scmp.lt.s32.totalorder %s290_s12, %s1123_s21 }
  0x3d   : > { %s287_s5 = scalar_lea.hbm %s1651_s0, %s867_s7  ;;  %p1121_p7 = pneg %p1120_p6 }
  0x3e   : > { %p1126_p11 = scmp.lt.s32.totalorder %s1124_s23, %s1117_s10 }
  0x40   : > { %p1127_p0 = por %p1126_p11, %p1125_p9 }
  0x42   : > { %p1128_p1 = pnand %p1127_p0, %p1121_p7 }
  0x44   : > { %1131 = shalt.err (!%p1128_p1)
}
  0x45   : > { %959 = dma.hbm_to_vmem [thread:$0]  (!%p1452_p3), %s287_s5, 128, %s290_s12, %s277_s14  }
  0x46   : > { %298 = sbr.rel (%p1402_p8) target bundleno = 649 (0x289), region = 40  ;;  %s1463_s6 = sand.u32 (!%p1402_p8), 1, %s1264_s25  }
  0x47   : > { %s869_s7 = sshll.u32 (!%p1402_p8), %s1463_s6, 3  ;;  %s301_s16 = scalar_lea.sflag (!%p1402_p8), [#allocation3], %s1463_s6 }
  0x48   : > { %s304_s15 = scalar_lea.vmem (!%p1402_p8), [#allocation2], %s869_s7 }
  0x4b   : > { %1243 = dma.done.wait (%p1392_p4), %s301_s16, 128  }
  0x4c   : > { %1245 = vsyncadd (%p1392_p4), %s301_s16, 4294967168  ;;  %p1653_p1 = scmp.eq.s32.totalorder %s1381_s9, 0 }
  0x4e   : > { %1247 = dma.done.wait (%p1653_p1), [#allocation6], 3072   ;;  %p1654_p10 = pmov %p1653_p1 }
  0x4f   : > { %v350_v0 = vld [vmem:[%s304_s15] sm:$0xff]  ;;  %v1294_v3 = vmov 0.0   ;;  %v1055_v14 = vld [vmem:[#allocation5 + $0x80] ss:$12 sps:$4 sm:$0xff]   ;;  %v1295_v22 = vmov 0   ;;  %vm1296_vm0 = vmmov 0   ;;  %v414_v41 = vlaneseq }
  0x50   : > { %1249 = vsyncadd (%p1654_p10), [#allocation6], 4294964224  ;;  %353 = vadd.xlane.f32.xlu0 %v350_v0  ;;  %v1044_v1 = vld [vmem:[#allocation5 + $0xac] ss:$12 sps:$4 sm:$0xff]   ;;  %v1046_v2 = vld [vmem:[#allocation5 + $0xa8] ss:$12 sps:$4 sm:$0xff]   ;;  %920 = vmatprep.subr.bf16.mxu1 %v1294_v3 }
  0x51   : > { %v1047_v4 = vld [vmem:[#allocation5 + $0xb0] ss:$12 sps:$4 sm:$0xff]   ;;  %v1048_v5 = vld [vmem:[#allocation5 + $0x94] ss:$12 sps:$4 sm:$0xff]   ;;  %557 = vmatprep.subr.bf16.mxu0 %v1044_v1  ;;  %v1051_v7 = vld [vmem:[#allocation5 + $0x98] ss:$12 sps:$4 sm:$0xff]   ;;  %589 = vmatprep.mubr.bf16.mxu0 %v1295_v22 }
  0x52   : > { %558 = vmatpush1.bf16.msra.mxu0 %v1046_v2  ;;  %921 = vmatpush3.bf16.msra.mxu1 %v1047_v4  ;;  %v1050_v6 = vld [vmem:[#allocation5 + $0x90] ss:$12 sps:$4 sm:$0xff]   ;;  %v1054_v13 = vld [vmem:[#allocation5 + $0x78] ss:$12 sps:$4 sm:$0xff]   ;;  %v1058_v16 = vld [vmem:[#allocation5 + $0x60] ss:$12 sps:$4 sm:$0xff]  }
  0x53   : > { %559 = vmatprep.subr.bf16.mxu0 %v1048_v5  ;;  %922 = vmatprep.subr.bf16.mxu1 %v1294_v3  ;;  %v1052_v12 = vld [vmem:[#allocation5 + $0x7c] ss:$12 sps:$4 sm:$0xff]   ;;  %v1056_v15 = vld [vmem:[#allocation5 + $0x64] ss:$12 sps:$4 sm:$0xff]   ;;  %v1060_v18 = vld [vmem:[#allocation5 + $0x4c] ss:$12 sps:$4 sm:$0xff]  }
  0x54   : > { %v1059_v17 = vld [vmem:[#allocation5 + $0x68] ss:$12 sps:$4 sm:$0xff]   ;;  %v1063_v20 = vld [vmem:[#allocation5 + $0x50] ss:$12 sps:$4 sm:$0xff]   ;;  %936 = vmatprep.mubr.msk.bf16.mxu1 %vm1296_vm0, %v1294_v3  ;;  %v1067_v24 = vld [vmem:[#allocation5 + $0x38] ss:$12 sps:$4 sm:$0xff]  }
  0x55   : > { %v1062_v19 = vld [vmem:[#allocation5 + $0x48] ss:$12 sps:$4 sm:$0xff]   ;;  %v1066_v23 = vld [vmem:[#allocation5 + $0x30] ss:$12 sps:$4 sm:$0xff]   ;;  %v1070_v26 = vld [vmem:[#allocation5 + $0x18] ss:$12 sps:$4 sm:$0xff]  }
  0x56   : > { %560 = vmatpush1.bf16.msra.mxu0 %v1050_v6  ;;  %923 = vmatpush3.bf16.msra.mxu1 %v1051_v7  ;;  %v1064_v21 = vld [vmem:[#allocation5 + $0x34] ss:$12 sps:$4 sm:$0xff]   ;;  %v1068_v25 = vld [vmem:[#allocation5 + $0x1c] ss:$12 sps:$4 sm:$0xff]   ;;  %v1072_v28 = vld [vmem:[#allocation5 + $0x4] ss:$12 sps:$4 sm:$0xff]  }
  0x57   : > { %924 = vmatprep.subr.bf16.mxu1 %v1294_v3  ;;  %561 = vmatprep.subr.bf16.mxu0 %v1052_v12  ;;  %v1071_v27 = vld [vmem:[#allocation5 + $0x20] ss:$12 sps:$4 sm:$0xff]   ;;  %v1075_v30 = vld [vmem:[#allocation5 + $0x8] ss:$12 sps:$4 sm:$0xff]   ;;  %v874_v35 = vld [vmem:[%s1616_s1] ss:$0 sm:$0xff] }
  0x58   : > { %v1074_v29 = vld [vmem:[#allocation5] ss:$12 sps:$4 sm:$0xff]   ;;  %v875_v37 = vld [vmem:[%s1617_s2] ss:$0 sm:$0xff]  ;;  %v415_v42 = vshrl.u32 %v414_v41, 7  ;;  %s1655_s18 = sld [smem:[#allocation21_spill]] }
  0x59   : > { %s903_s19 = sshll.u32 %s1276_s28, 1  ;;  %s1486_s20 = sshll.u32 %s1463_s6, 2 }
  0x5a   : > { %562 = vmatpush1.bf16.msra.mxu0 %v1054_v13  ;;  %925 = vmatpush3.bf16.msra.mxu1 %v1055_v14  ;;  %v416_v43 = vsub.s32 0, %v415_v42  ;;  %v424_v44 = vsub.s32 2, %v415_v42  ;;  %v420_v46 = vsub.s32 1, %v415_v42  ;;  %s666_s14 = sadd.s32 %s1272_s27, %s903_s19  ;;  %s334_s21 = scalar_lea.vmem [#allocation7], %s1486_s20 }
  0x5b   : > { %926 = vmatprep.subr.bf16.mxu1 %v1294_v3  ;;  %563 = vmatprep.subr.bf16.mxu0 %v1056_v15  ;;  %s904_s3 = sshll.u32 %s666_s14, 6  ;;  %s670_s23 = sshll.u32 %s334_s21, 4  ;;  %s1500_s23 = int_to_ptr.vmem [resolvable:$true] %s670_s23 }
  0x5c   : > { %s1633_s28 = scalar_lea.vmem [#allocation8], %s1486_s20  ;;  %s348_s16 = scalar_lea.vmem [#allocation10], %s1486_s20 }
  0x5d   : > { %s685_s7 = sshll.u32 %s1633_s28, 4  ;;  %s700_s15 = sshll.u32 %s348_s16, 4  ;;  %s1507_s7 = int_to_ptr.vmem [resolvable:$true] %s685_s7  ;;  %s1514_s15 = int_to_ptr.vmem [resolvable:$true] %s700_s15 }
  0x5e   : > { %564 = vmatpush1.bf16.msra.mxu0 %v1058_v16  ;;  %927 = vmatpush3.bf16.msra.mxu1 %v1059_v17  ;;  %v412_v45 = vld [vmem:[%s1655_s18] sm:$0x7]  ;;  %s1656_s5 = sld [smem:[#allocation22_spill]]  ;;  %s645_s28 = scalar_lea.sflag [#allocation4], %s1463_s6 }
  0x5f   : > { %565 = vmatprep.subr.bf16.mxu0 %v1060_v18  ;;  %928 = vmatprep.subr.bf16.mxu1 %v1294_v3  ;;  %v417_v47 = vrot.slane %v412_v45, %v416_v43  ;;  %v425_v48 = vrot.slane %v412_v45, %v424_v44  ;;  %v421_v49 = vrot.slane %v412_v45, %v420_v46  ;;  %s1658_s18 = sld [smem:[#allocation23_spill]]  ;;  %s1132_s0 = scalar_lea.vmem %s1500_s23, 64 }
  0x60   : > { %s1659_s4 = sld [smem:[#allocation24_spill]]  ;;  %p1133_p4 = scmp.ne.s32.totalorder %s1500_s23, %s1132_s0 }
  0x61   : > { %s1297_s13 = smov [#allocation7]  }
  0x62   : > { %566 = vmatpush1.bf16.msra.mxu0 %v1062_v19  ;;  %929 = vmatpush3.bf16.msra.mxu1 %v1063_v20  ;;  %p1134_p8 = pnand %p1133_p4, %p1426_p12 }
  0x63   : > { %567 = vmatprep.subr.bf16.mxu0 %v1064_v21  ;;  %930 = vmatprep.subr.bf16.mxu1 %v1294_v3 }
  0x64   : > { %s1498_s11 = scalar_lea.hbm %s1656_s5, %s904_s3  ;;  %p1135_p13 = pneg %p1134_p8 }
  0x65   : > { %s1505_s19 = scalar_lea.hbm %s1658_s18, %s904_s3 }
  0x66   : > { %568 = vmatpush1.bf16.msra.mxu0 %v1066_v23  ;;  %931 = vmatpush3.bf16.msra.mxu1 %v1067_v24  ;;  %s1512_s10 = scalar_lea.hbm %s1659_s4, %s904_s3 }
  0x67   : > { %569 = vmatprep.subr.bf16.mxu0 %v1068_v25  ;;  %932 = vmatprep.subr.bf16.mxu1 %v1294_v3 }
  0x6a   : > { %570 = vmatpush1.bf16.msra.mxu0 %v1070_v26  ;;  %933 = vmatpush3.bf16.msra.mxu1 %v1071_v27 }
  0x6b   : > { %571 = vmatprep.subr.bf16.mxu0 %v1072_v28  ;;  %934 = vmatprep.subr.bf16.mxu1 %v1294_v3 }
  0x6e   : > { %572 = vmatpush1.bf16.msra.mxu0 %v1074_v29  ;;  %935 = vmatpush3.bf16.msra.mxu1 %v1075_v30 }
  0xd9   : > { %v354_v8 = vpop.xlane.xlu0 %353 }
  0xda   : > { %v356_v9 = vmul.f32 0.0078125, %v354_v8 }
  0xdc   : > { %v357_v10 = vsub.f32 %v350_v0, %v356_v9 }
  0xde   : > { %v358_v11 = vmul.f32 %v357_v10, %v357_v10 }
  0xe0   : > { %359 = vadd.xlane.f32.xlu0 %v358_v11 }
 0x169   : > { %v360_v31 = vpop.xlane.xlu0 %359 }
 0x16a   : > { %v361_v32 = vmul.f32 0.0078125, %v360_v31 }
 0x16c   : > { %v362_v33 = vadd.f32 1e-05, %v361_v32 }
 0x16e   : > { %1076 = vrsqrt.f32 %v362_v33 }
 0x17b   : > { %v1077_v34 = vpop.eup %1076 }
 0x17c   : > { %v364_v36 = vmul.f32 %v1077_v34, %v357_v10 }
 0x17e   : > { %v371_v38 = vmul.f32 %v874_v35, %v364_v36 }
 0x180   : > { %v378_v39 = vadd.f32 %v875_v37, %v371_v38 }
 0x182   : > { %v379_v40 = vpack.c.bf16 %v378_v39, %v378_v39 }
 0x184   : > { %590 = vmatmul.mubr.bf16.vlgmr.msra.gmra.mxu0 %v379_v40  ;;  %937 = vmatmul.mubr.bf16.vlgmr.msra.gmra.mxu1 %v379_v40 }
 0x244   : > { %v591_v50 = vpop.f32.mrf.mxu0  ;;  %v632_v51 = vpop.f32.mrf.mxu1 }
 0x245   : > { %v592_v52 = vadd.f32 %v591_v50, %v417_v47  ;;  %v633_v53 = vadd.f32 %v632_v51, %v425_v48 }
 0x246   : > { %v593_v54 = vpop.f32.mrf.mxu0  ;;  %v938_v55 = vpop.f32.mrf.mxu1 }
 0x247   : > { %v638_v56 = vpack.c.bf16 %v592_v52, %v592_v52  ;;  %v642_v57 = vpack.c.bf16 %v633_v53, %v633_v53  ;;  %v594_v58 = vadd.f32 %v593_v54, %v421_v49 }
 0x248   : > { %v595_v59 = vpop.f32.mrf.mxu0  ;;  %v635_v60 = vpop.f32.mrf.mxu1 }
 0x249   : > { %639 = vst [vmem:[%s334_s21] sm:$0xf] %v638_v56  ;;  %643 = vst [vmem:[%s348_s16] sm:$0xf] %v642_v57  ;;  %v640_v61 = vpack.c.bf16 %v594_v58, %v594_v58  ;;  %s1136_s21 = sshll.u32 %s1297_s13, 4  ;;  %s1137_s21 = int_to_ptr.vmem [resolvable:$false] %s1136_s21 }
 0x24a   : > { %v596_v62 = vpop.f32.mrf.mxu0  ;;  %v939_v63 = vpop.f32.mrf.mxu1  ;;  %s1138_s16 = scalar_lea.vmem %s1137_s21, 128  ;;  %p1139_p3 = scmp.lt.s32.totalorder %s1500_s23, %s1137_s21 }
 0x24b   : > { %p1140_p5 = scmp.lt.s32.totalorder %s1138_s16, %s1132_s0 }
 0x24d   : > { %p1141_p2 = por %p1140_p5, %p1139_p3 }
 0x24f   : > { %p1142_p6 = pnand %p1141_p2, %p1135_p13 }
 0x251   : > { %1145 = shalt.err (!%p1142_p6)
}
 0x252   : > { %s1146_s3 = scalar_lea.hbm %s1498_s11, 64  ;;  %s1150_s14 = scalar_lea.hbm %s1656_s5, 256 }
 0x253   : > { %p1147_p7 = scmp.ne.s32.totalorder %s1498_s11, %s1146_s3  ;;  %p1151_p0 = scmp.lt.s32.totalorder %s1498_s11, %s1656_s5 }
 0x254   : > { %p1152_p1 = scmp.lt.s32.totalorder %s1150_s14, %s1146_s3 }
 0x255   : > { %p1148_p9 = pnand %p1147_p7, %p1426_p12 }
 0x256   : > { %p1153_p10 = por %p1152_p1, %p1151_p0 }
 0x257   : > { %p1149_p11 = pneg %p1148_p9 }
 0x259   : > { %p1154_p4 = pnand %p1153_p10, %p1149_p11 }
 0x25b   : > { %1157 = shalt.err (!%p1154_p4)
}
 0x25c   : > { %946 = dma.vmem_to_hbm [thread:$0]  (%p1426_p12), %s1500_s23, 64, %s1498_s11, %s645_s28  }
 0x25d   : > { %s1660_s0 = scalar_lea.vmem [#allocation8], %s1486_s20  ;;  %s1661_s21 = sand.u32 1, %s1381_s9  }
 0x25e   : > { %641 = vst [vmem:[%s1660_s0] sm:$0xf] %v640_v61  ;;  %s1541_s16 = scalar_lea.sflag [#allocation9], %s1661_s21  ;;  %s1158_s3 = scalar_lea.vmem %s1507_s7, 64 }
 0x25f   : > { %p1159_p8 = scmp.ne.s32.totalorder %s1507_s7, %s1158_s3  ;;  %s1298_s6 = smov [#allocation8]  }
 0x260   : > { %s1162_s17 = sshll.u32 %s1298_s6, 4  ;;  %s1163_s17 = int_to_ptr.vmem [resolvable:$false] %s1162_s17 }
 0x261   : > { %p1160_p13 = pnand %p1159_p8, %p1426_p12  ;;  %s1164_s14 = scalar_lea.vmem %s1163_s17, 128 }
 0x262   : > { %p1165_p5 = scmp.lt.s32.totalorder %s1507_s7, %s1163_s17  ;;  %p1166_p2 = scmp.lt.s32.totalorder %s1164_s14, %s1158_s3 }
 0x263   : > { %p1161_p3 = pneg %p1160_p13 }
 0x264   : > { %p1167_p6 = por %p1166_p2, %p1165_p5 }
 0x266   : > { %p1168_p7 = pnand %p1167_p6, %p1161_p3 }
 0x268   : > { %1171 = shalt.err (!%p1168_p7)
}
 0x269   : > { %s1172_s9 = scalar_lea.hbm %s1505_s19, 64  ;;  %s1176_s28 = scalar_lea.hbm %s1658_s18, 256 }
 0x26a   : > { %p1173_p9 = scmp.ne.s32.totalorder %s1505_s19, %s1172_s9  ;;  %p1177_p1 = scmp.lt.s32.totalorder %s1505_s19, %s1658_s18 }
 0x26b   : > { %p1178_p10 = scmp.lt.s32.totalorder %s1176_s28, %s1172_s9 }
 0x26c   : > { %p1174_p11 = pnand %p1173_p9, %p1426_p12 }
 0x26d   : > { %p1179_p4 = por %p1178_p10, %p1177_p1 }
 0x26e   : > { %p1175_p0 = pneg %p1174_p11 }
 0x270   : > { %p1180_p8 = pnand %p1179_p4, %p1175_p0 }
 0x272   : > { %1183 = shalt.err (!%p1180_p8)
}
 0x273   : > { %947 = dma.vmem_to_hbm [thread:$0]  (%p1426_p12), %s1507_s7, 64, %s1505_s19, %s1541_s16  }
 0x274   : > { %s1184_s13 = scalar_lea.vmem %s1514_s15, 64  ;;  %s1299_s0 = smov [#allocation10]  }
 0x275   : > { %p1185_p13 = scmp.ne.s32.totalorder %s1514_s15, %s1184_s13  ;;  %s1188_s21 = sshll.u32 %s1299_s0, 4  ;;  %s1189_s21 = int_to_ptr.vmem [resolvable:$false] %s1188_s21 }
 0x276   : > { %s1190_s3 = scalar_lea.vmem %s1189_s21, 128  ;;  %p1191_p2 = scmp.lt.s32.totalorder %s1514_s15, %s1189_s21 }
 0x277   : > { %p1186_p3 = pnand %p1185_p13, %p1426_p12  ;;  %p1192_p6 = scmp.lt.s32.totalorder %s1190_s3, %s1184_s13 }
 0x279   : > { %p1187_p5 = pneg %p1186_p3  ;;  %p1193_p7 = por %p1192_p6, %p1191_p2 }
 0x27b   : > { %p1194_p9 = pnand %p1193_p7, %p1187_p5 }
 0x27d   : > { %1197 = shalt.err (!%p1194_p9)
}
 0x27e   : > { %s1198_s6 = scalar_lea.hbm %s1512_s10, 64  ;;  %s1202_s17 = scalar_lea.hbm %s1659_s4, 256 }
 0x27f   : > { %p1199_p11 = scmp.ne.s32.totalorder %s1512_s10, %s1198_s6  ;;  %p1203_p10 = scmp.lt.s32.totalorder %s1512_s10, %s1659_s4 }
 0x280   : > { %p1204_p4 = scmp.lt.s32.totalorder %s1202_s17, %s1198_s6 }
 0x281   : > { %p1200_p0 = pnand %p1199_p11, %p1426_p12 }
 0x282   : > { %p1205_p8 = por %p1204_p4, %p1203_p10 }
 0x283   : > { %p1201_p1 = pneg %p1200_p0 }
 0x285   : > { %p1206_p13 = pnand %p1205_p8, %p1201_p1 }
 0x287   : > { %1209 = shalt.err (!%p1206_p13)
}
 0x288   : > { %948 = dma.vmem_to_hbm [thread:$0]  (%p1426_p12), %s1514_s15, 64, %s1512_s10, %s1541_s16  }
 0x289 PF: > { %s1662_s20 = sld [smem:[#allocation15_spill]]  ;;  %p973_p3 = scmp.ge.s32.totalorder %s1288_s8, 2 }
 0x28a   : > { %s1663_s23 = sld [smem:[#allocation16_spill]] }
 0x28f   : > { %s712_s28 = sand.u32 1, %s1662_s20  }
 0x290   : > { %p1664_p5 = scmp.ne.s32.totalorder %s1663_s23, 0  ;;  %s713_s11 = scalar_lea.sflag [#allocation4], %s712_s28 }
 0x292   : > { %p961_p2 = pnand %p973_p3, %p1664_p5 }
 0x294   : > { %p962_p6 = pneg %p961_p2 }
 0x296   : > { %1251 = dma.done.wait (%p962_p6), %s713_s11, 64  }
 0x297   : > { %1253 = vsyncadd (%p962_p6), %s713_s11, 4294967232  ;;  %s1665_s27 = sadd.s32 4294967294, %s1288_s8  }
 0x298   : > { %s721_s13 = sand.u32 1, %s1665_s27  }
 0x299   : > { %s722_s12 = scalar_lea.sflag [#allocation9], %s721_s13 }
 0x29a   : > { %1255 = dma.done.wait (%p962_p6), %s722_s12, 128  }
 0x29b   : > { %1257 = vsyncadd (%p962_p6), %s722_s12, 4294967168  ;;  %s28_s8 = sadd.s32 1, %s1288_s8   ;;  %s1666_s10 = smov %s1443_s24 }
 0x29c   : > { %p25_p12 = scmp.ge.s32.totalorder %s28_s8, 6   ;;  %s1667_s15 = sld [smem:[#allocation17_spill]] }
 0x29d   : > { %s1668_s24 = smov %s1264_s25  ;;  %s1669_s25 = smov %s1268_s26 }
 0x29e   : > { %s1670_s26 = smov %s1666_s10  ;;  %s1671_s27 = smov %s1280_s29 }
 0x29f   : > { %s1672_s28 = smov %s1284_s30  ;;  %s1674_s30 = smov %s1680_s22 }
 0x2a0   :  { %27 = sbr.rel (!%p25_p12) target bundleno = 17 (0x11), region = 121 }
 0x2a2   : > { %s1673_s29 = smov %s1667_s15 }
 0x2a5   :  { %736 = vsyncpa [#allocation3], 1 }
 0x2a6   :  { %738 = vsyncpa [#allocation3 + $0x1], 1 }
 0x2a7   :  { %739 = vsyncpa [#allocation6], 1 }
 0x2a8   :  { %740 = vsyncpa [#allocation4], 1 }
 0x2a9   :  { %742 = vsyncpa [#allocation4 + $0x1], 1 }
 0x2aa   :  { %743 = vsyncpa [#allocation9], 1 }
 0x2ab   :  { %745 = vsyncpa [#allocation9 + $0x1], 1 }

// kernel: tpu_custom_call.1
= control target key start
LH: loop header
LB: loop body
LE: loop exit
PB: predicated region body
PF: predicated region fallthrough
CT: control target
= control target key end

     0   :  { %s1615_s0 = inlined_call_operand.hbm [shape: f32[2,16,128], index: 0, kind: input, shape index: {}]   ;;  %s1616_s1 = inlined_call_operand.vmem [shape: f32[1,128], index: 1, kind: input, shape index: {}]   ;;  %s1617_s2 = inlined_call_operand.vmem [shape: f32[1,128], index: 2, kind: input, shape index: {}]   ;;  %s1618_s3 = inlined_call_operand.hbm [shape: bf16[128,384], index: 3, kind: input, shape index: {}]   ;;  %s1619_s4 = inlined_call_operand.vmem [shape: f32[1,384], index: 4, kind: input, shape index: {}]   ;;  %s1620_s5 = inlined_call_operand.hbm [shape: bf16[2,16,128], index: 5, kind: output, shape index: {0}]   ;;  %s1621_s6 = inlined_call_operand.hbm [shape: bf16[2,16,128], index: 6, kind: output, shape index: {1}]   ;;  %s1622_s7 = inlined_call_operand.hbm [shape: bf16[2,16,128], index: 7, kind: output, shape index: {2}]  }
   0x1   :  { %1634 = sst [smem:[#allocation19_spill]] %s1615_s0 }
   0x2   :  { %1635 = sst [smem:[#allocation20_spill]] %s1618_s3 }
   0x3   :  { %1636 = sst [smem:[#allocation21_spill]] %s1619_s4 }
   0x4   :  { %1637 = sst [smem:[#allocation22_spill]] %s1620_s5 }
   0x5   :  { %1638 = sst [smem:[#allocation23_spill]] %s1621_s6 }
   0x6   :  { %1639 = sst [smem:[#allocation24_spill]] %s1622_s7 }
   0x7   :  { %13 = vsyncpa [#allocation3], 0 }
   0x8   :  { %15 = vsyncpa [#allocation3 + $0x1], 0 }
   0x9   :  { %16 = vsyncpa [#allocation6], 0 }
   0xa   :  { %17 = vsyncpa [#allocation4], 0 }
   0xb   :  { %19 = vsyncpa [#allocation4 + $0x1], 0 }
   0xc   :  { %20 = vsyncpa [#allocation9], 0 }
   0xd   :  { %22 = vsyncpa [#allocation9 + $0x1], 0  ;;  %s1340_s24 = smov 0   ;;  %s1342_s25 = smov 0  }
   0xe   :  { %s1344_s26 = smov 0   ;;  %s1346_s27 = smov 0  }
   0xf   :  { %s1348_s28 = smov 0   ;;  %s1350_s29 = smov 0  }
  0x10   :  { %s1352_s30 = smov 0   ;;  %s1354_s8 = smov 0  }
  0x11 LB: > { %1640 = sst [smem:[#allocation15_spill]] %s1260_s24  ;;  %s1381_s9 = sadd.s32 4294967295, %s1288_s8   ;;  %s1288_s8 = sphi %s1354_s8, %s28_s8   ;;  %s1284_s30 = sphi %s1352_s30, %s1674_s30   ;;  %s1280_s29 = sphi %s1350_s29, %s1673_s29   ;;  %s1276_s28 = sphi %s1348_s28, %s1672_s28   ;;  %s1272_s27 = sphi %s1346_s27, %s1671_s27   ;;  %s1268_s26 = sphi %s1344_s26, %s1670_s26   ;;  %s1264_s25 = sphi %s1342_s25, %s1669_s25   ;;  %s1260_s24 = sphi %s1340_s24, %s1668_s24  }
  0x12   : > { %s1623_s10 = sadd.s32 4294967294, %s1288_s8   ;;  %p62_p0 = scmp.ne.s32.totalorder %s1264_s25, %s1260_s24 }
  0x13   : > { %p1632_p1 = scmp.eq.s32.totalorder %s1381_s9, 0  ;;  %p178_p3 = scmp.eq.s32.totalorder %s1623_s10, 3 }
  0x14   : > { %p862_p5 = scmp.ge.s32.totalorder %s1288_s8, 1  ;;  %p241_p7 = scmp.lt.s32.totalorder %s1288_s8, 5 }
  0x15   : > { %p1392_p4 = por %p1632_p1, %p62_p0  ;;  %p1397_p6 = por %p178_p3, %p62_p0 }
  0x16   : > { %p1402_p8 = pnand %p862_p5, %p241_p7  ;;  %s1290_s14 = smov [#allocation5]  }
  0x17   : > { %s1642_s12 = scalar_select %p1397_p6, 1, 0 }
  0x18   : > { %s259_s15 = sshll.u32 %s1290_s14, 4  ;;  %p952_p9 = pneg %p1402_p8  ;;  %s260_s15 = int_to_ptr.vmem [resolvable:$true] %s259_s15 }
  0x19   : > { %1643 = sst [smem:[#allocation16_spill]] %s1642_s12  ;;  %s1089_s16 = scalar_lea.vmem %s260_s15, 3072 }
  0x1a   : > { %p953_p10 = pnand %p952_p9, %p1632_p1  ;;  %p1090_p12 = scmp.ne.s32.totalorder %s260_s15, %s1089_s16 }
  0x1b   : > { %p1097_p3 = scmp.lt.s32.totalorder %s260_s15, %s260_s15  ;;  %p1098_p2 = scmp.lt.s32.totalorder %s1089_s16, %s1089_s16 }
  0x1c   : > { %p1080_p11 = pneg %p953_p10 }
  0x1d   : > { %p1099_p6 = por %p1098_p2, %p1097_p3 }
  0x1e   : > { %p1092_p13 = pnand %p1090_p12, %p1080_p11 }
  0x20   : > { %p1093_p0 = pneg %p1092_p13 }
  0x22   : > { %p1100_p5 = pnand %p1099_p6, %p1093_p0 }
  0x24   : > { %1103 = shalt.err (!%p1100_p5)
}
  0x25   : > { %s1291_s17 = smov 192   ;;  %s1292_s18 = smov 12  }
  0x26   : > { %s1645_s3 = sld [smem:[#allocation20_spill]]  ;;  %s37_s21 = sadd.s32 1, %s1280_s29 }
  0x27   : > { %p38_p2 = scmp.ge.s32.totalorder %s37_s21, 2  ;;  %s40_s22 = sadd.s32 1, %s1284_s30 }
  0x28   : > { %s49_s23 = sadd.s32 1, %s1268_s26  ;;  %p56_p6 = scmp.ne.s32.totalorder %s1268_s26, %s1264_s25 }
  0x29   : > { %s1676_s21 = smov (%p38_p2, %s37_s21), 0  ;;  %s1678_s22 = smov (!%p38_p2, %s40_s22), %s1284_s30 }
  0x2a   : > { %1646 = sst [smem:[#allocation17_spill]] %s1676_s21  ;;  %s45_s14 = ssub.s32 %s1280_s29, %s1676_s21 }
  0x2b   : > { %p57_p7 = scmp.eq.s32.totalorder %s1288_s8, 0  ;;  %p42_p9 = scmp.ge.s32.totalorder %s1678_s22, 2 }
  0x2c   : > { %955 = dma.hbm_to_vmem [thread:$0]  (!%p953_p10), %s1645_s3, 3072, %s260_s15, [#allocation6], %s1291_s17, %s1291_s17, %s1292_s18  }
  0x2d   : > { %p1647_p11 = scmp.eq.s32.totalorder %s1381_s9, 3  ;;  %p1430_p10 = por %p57_p7, %p56_p6 }
  0x2e   : > { %p971_p13 = scmp.lt.s32.totalorder %s1288_s8, 4  ;;  %s1680_s22 = smov (%p42_p9, %s1678_s22), 0 }
  0x2f   : > { %p1426_p12 = por %p1647_p11, %p56_p6  ;;  %s276_s17 = sand.u32 1, %s1268_s26  }
  0x30   : > { %s866_s18 = sshll.u32 %s1284_s30, 1  ;;  %s44_s19 = ssub.s32 %s1284_s30, %s1680_s22 }
  0x31   : > { %s1648_s16 = scalar_select %p1426_p12, 1, 0 }
  0x32   : > { %s46_s20 = sor.u32 %s45_s14, %s44_s19  ;;  %s865_s10 = sshll.u32 %s276_s17, 3 }
  0x33   : > { %1649 = sst [smem:[#allocation18_spill]] %s1648_s16  ;;  %p47_p0 = scmp.eq.s32.totalorder %s46_s20, 0 }
  0x34   : > { %s285_s3 = sadd.s32 %s1280_s29, %s866_s18  ;;  %s280_s21 = scalar_lea.vmem [#allocation2], %s865_s10 }
  0x35   : > { %s289_s12 = sshll.u32 %s280_s21, 4  ;;  %s867_s7 = sshll.u32 %s285_s3, 7  ;;  %s290_s12 = int_to_ptr.vmem [resolvable:$true] %s289_s12 }
  0x36   : > { %s1443_s24 = scalar_select %p47_p0, %s1268_s26, %s49_s23  }
  0x37   : > { %s1651_s0 = sld [smem:[#allocation19_spill]]  ;;  %p1452_p3 = pnand %p971_p13, %p1430_p10 }
  0x38   : > { %s277_s14 = scalar_lea.sflag [#allocation3], %s276_s17  ;;  %s1117_s10 = scalar_lea.vmem %s290_s12, 128 }
  0x39   : > { %p1106_p5 = pneg %p1452_p3  ;;  %p1118_p2 = scmp.ne.s32.totalorder %s290_s12, %s1117_s10 }
  0x3a   : > { %s1293_s3 = smov [#allocation2]  }
  0x3b   : > { %p1120_p6 = pnand %p1118_p2, %p1106_p5  ;;  %s1122_s21 = sshll.u32 %s1293_s3, 4  ;;  %s1123_s21 = int_to_ptr.vmem [resolvable:$false] %s1122_s21 }
  0x3c   : > { %s1124_s23 = scalar_lea.vmem %s1123_s21, 256  ;;  %p1125_p9 = scmp.lt.s32.totalorder %s290_s12, %s1123_s21 }
  0x3d   : > { %s287_s5 = scalar_lea.hbm %s1651_s0, %s867_s7  ;;  %p1121_p7 = pneg %p1120_p6 }
  0x3e   : > { %p1126_p11 = scmp.lt.s32.totalorder %s1124_s23, %s1117_s10 }
  0x40   : > { %p1127_p0 = por %p1126_p11, %p1125_p9 }
  0x42   : > { %p1128_p1 = pnand %p1127_p0, %p1121_p7 }
  0x44   : > { %1131 = shalt.err (!%p1128_p1)
}
  0x45   : > { %959 = dma.hbm_to_vmem [thread:$0]  (!%p1452_p3), %s287_s5, 128, %s290_s12, %s277_s14  }
  0x46   : > { %298 = sbr.rel (%p1402_p8) target bundleno = 649 (0x289), region = 40  ;;  %s1463_s6 = sand.u32 (!%p1402_p8), 1, %s1264_s25  }
  0x47   : > { %s869_s7 = sshll.u32 (!%p1402_p8), %s1463_s6, 3  ;;  %s301_s16 = scalar_lea.sflag (!%p1402_p8), [#allocation3], %s1463_s6 }
  0x48   : > { %s304_s15 = scalar_lea.vmem (!%p1402_p8), [#allocation2], %s869_s7 }
  0x4b   : > { %1243 = dma.done.wait (%p1392_p4), %s301_s16, 128  }
  0x4c   : > { %1245 = vsyncadd (%p1392_p4), %s301_s16, 4294967168  ;;  %p1653_p1 = scmp.eq.s32.totalorder %s1381_s9, 0 }
  0x4e   : > { %1247 = dma.done.wait (%p1653_p1), [#allocation6], 3072   ;;  %p1654_p10 = pmov %p1653_p1 }
  0x4f   : > { %v350_v0 = vld [vmem:[%s304_s15] sm:$0xff]  ;;  %v1294_v3 = vmov 0.0   ;;  %v1055_v14 = vld [vmem:[#allocation5 + $0x80] ss:$12 sps:$4 sm:$0xff]   ;;  %v1295_v22 = vmov 0   ;;  %vm1296_vm0 = vmmov 0   ;;  %v414_v41 = vlaneseq }
  0x50   : > { %1249 = vsyncadd (%p1654_p10), [#allocation6], 4294964224  ;;  %353 = vadd.xlane.f32.xlu0 %v350_v0  ;;  %v1044_v1 = vld [vmem:[#allocation5 + $0xac] ss:$12 sps:$4 sm:$0xff]   ;;  %v1046_v2 = vld [vmem:[#allocation5 + $0xa8] ss:$12 sps:$4 sm:$0xff]   ;;  %920 = vmatprep.subr.bf16.mxu1 %v1294_v3 }
  0x51   : > { %v1047_v4 = vld [vmem:[#allocation5 + $0xb0] ss:$12 sps:$4 sm:$0xff]   ;;  %v1048_v5 = vld [vmem:[#allocation5 + $0x94] ss:$12 sps:$4 sm:$0xff]   ;;  %557 = vmatprep.subr.bf16.mxu0 %v1044_v1  ;;  %v1051_v7 = vld [vmem:[#allocation5 + $0x98] ss:$12 sps:$4 sm:$0xff]   ;;  %589 = vmatprep.mubr.bf16.mxu0 %v1295_v22 }
  0x52   : > { %558 = vmatpush1.bf16.msra.mxu0 %v1046_v2  ;;  %921 = vmatpush3.bf16.msra.mxu1 %v1047_v4  ;;  %v1050_v6 = vld [vmem:[#allocation5 + $0x90] ss:$12 sps:$4 sm:$0xff]   ;;  %v1054_v13 = vld [vmem:[#allocation5 + $0x78] ss:$12 sps:$4 sm:$0xff]   ;;  %v1058_v16 = vld [vmem:[#allocation5 + $0x60] ss:$12 sps:$4 sm:$0xff]  }
  0x53   : > { %559 = vmatprep.subr.bf16.mxu0 %v1048_v5  ;;  %922 = vmatprep.subr.bf16.mxu1 %v1294_v3  ;;  %v1052_v12 = vld [vmem:[#allocation5 + $0x7c] ss:$12 sps:$4 sm:$0xff]   ;;  %v1056_v15 = vld [vmem:[#allocation5 + $0x64] ss:$12 sps:$4 sm:$0xff]   ;;  %v1060_v18 = vld [vmem:[#allocation5 + $0x4c] ss:$12 sps:$4 sm:$0xff]  }
  0x54   : > { %v1059_v17 = vld [vmem:[#allocation5 + $0x68] ss:$12 sps:$4 sm:$0xff]   ;;  %v1063_v20 = vld [vmem:[#allocation5 + $0x50] ss:$12 sps:$4 sm:$0xff]   ;;  %936 = vmatprep.mubr.msk.bf16.mxu1 %vm1296_vm0, %v1294_v3  ;;  %v1067_v24 = vld [vmem:[#allocation5 + $0x38] ss:$12 sps:$4 sm:$0xff]  }
  0x55   : > { %v1062_v19 = vld [vmem:[#allocation5 + $0x48] ss:$12 sps:$4 sm:$0xff]   ;;  %v1066_v23 = vld [vmem:[#allocation5 + $0x30] ss:$12 sps:$4 sm:$0xff]   ;;  %v1070_v26 = vld [vmem:[#allocation5 + $0x18] ss:$12 sps:$4 sm:$0xff]  }
  0x56   : > { %560 = vmatpush1.bf16.msra.mxu0 %v1050_v6  ;;  %923 = vmatpush3.bf16.msra.mxu1 %v1051_v7  ;;  %v1064_v21 = vld [vmem:[#allocation5 + $0x34] ss:$12 sps:$4 sm:$0xff]   ;;  %v1068_v25 = vld [vmem:[#allocation5 + $0x1c] ss:$12 sps:$4 sm:$0xff]   ;;  %v1072_v28 = vld [vmem:[#allocation5 + $0x4] ss:$12 sps:$4 sm:$0xff]  }
  0x57   : > { %924 = vmatprep.subr.bf16.mxu1 %v1294_v3  ;;  %561 = vmatprep.subr.bf16.mxu0 %v1052_v12  ;;  %v1071_v27 = vld [vmem:[#allocation5 + $0x20] ss:$12 sps:$4 sm:$0xff]   ;;  %v1075_v30 = vld [vmem:[#allocation5 + $0x8] ss:$12 sps:$4 sm:$0xff]   ;;  %v874_v35 = vld [vmem:[%s1616_s1] ss:$0 sm:$0xff] }
  0x58   : > { %v1074_v29 = vld [vmem:[#allocation5] ss:$12 sps:$4 sm:$0xff]   ;;  %v875_v37 = vld [vmem:[%s1617_s2] ss:$0 sm:$0xff]  ;;  %v415_v42 = vshrl.u32 %v414_v41, 7  ;;  %s1655_s18 = sld [smem:[#allocation21_spill]] }
  0x59   : > { %s903_s19 = sshll.u32 %s1276_s28, 1  ;;  %s1486_s20 = sshll.u32 %s1463_s6, 2 }
  0x5a   : > { %562 = vmatpush1.bf16.msra.mxu0 %v1054_v13  ;;  %925 = vmatpush3.bf16.msra.mxu1 %v1055_v14  ;;  %v416_v43 = vsub.s32 0, %v415_v42  ;;  %v424_v44 = vsub.s32 2, %v415_v42  ;;  %v420_v46 = vsub.s32 1, %v415_v42  ;;  %s666_s14 = sadd.s32 %s1272_s27, %s903_s19  ;;  %s334_s21 = scalar_lea.vmem [#allocation7], %s1486_s20 }
  0x5b   : > { %926 = vmatprep.subr.bf16.mxu1 %v1294_v3  ;;  %563 = vmatprep.subr.bf16.mxu0 %v1056_v15  ;;  %s904_s3 = sshll.u32 %s666_s14, 6  ;;  %s670_s23 = sshll.u32 %s334_s21, 4  ;;  %s1500_s23 = int_to_ptr.vmem [resolvable:$true] %s670_s23 }
  0x5c   : > { %s1633_s28 = scalar_lea.vmem [#allocation8], %s1486_s20  ;;  %s348_s16 = scalar_lea.vmem [#allocation10], %s1486_s20 }
  0x5d   : > { %s685_s7 = sshll.u32 %s1633_s28, 4  ;;  %s700_s15 = sshll.u32 %s348_s16, 4  ;;  %s1507_s7 = int_to_ptr.vmem [resolvable:$true] %s685_s7  ;;  %s1514_s15 = int_to_ptr.vmem [resolvable:$true] %s700_s15 }
  0x5e   : > { %564 = vmatpush1.bf16.msra.mxu0 %v1058_v16  ;;  %927 = vmatpush3.bf16.msra.mxu1 %v1059_v17  ;;  %v412_v45 = vld [vmem:[%s1655_s18] sm:$0x7]  ;;  %s1656_s5 = sld [smem:[#allocation22_spill]]  ;;  %s645_s28 = scalar_lea.sflag [#allocation4], %s1463_s6 }
  0x5f   : > { %565 = vmatprep.subr.bf16.mxu0 %v1060_v18  ;;  %928 = vmatprep.subr.bf16.mxu1 %v1294_v3  ;;  %v417_v47 = vrot.slane %v412_v45, %v416_v43  ;;  %v425_v48 = vrot.slane %v412_v45, %v424_v44  ;;  %v421_v49 = vrot.slane %v412_v45, %v420_v46  ;;  %s1658_s18 = sld [smem:[#allocation23_spill]]  ;;  %s1132_s0 = scalar_lea.vmem %s1500_s23, 64 }
  0x60   : > { %s1659_s4 = sld [smem:[#allocation24_spill]]  ;;  %p1133_p4 = scmp.ne.s32.totalorder %s1500_s23, %s1132_s0 }
  0x61   : > { %s1297_s13 = smov [#allocation7]  }
  0x62   : > { %566 = vmatpush1.bf16.msra.mxu0 %v1062_v19  ;;  %929 = vmatpush3.bf16.msra.mxu1 %v1063_v20  ;;  %p1134_p8 = pnand %p1133_p4, %p1426_p12 }
  0x63   : > { %567 = vmatprep.subr.bf16.mxu0 %v1064_v21  ;;  %930 = vmatprep.subr.bf16.mxu1 %v1294_v3 }
  0x64   : > { %s1498_s11 = scalar_lea.hbm %s1656_s5, %s904_s3  ;;  %p1135_p13 = pneg %p1134_p8 }
  0x65   : > { %s1505_s19 = scalar_lea.hbm %s1658_s18, %s904_s3 }
  0x66   : > { %568 = vmatpush1.bf16.msra.mxu0 %v1066_v23  ;;  %931 = vmatpush3.bf16.msra.mxu1 %v1067_v24  ;;  %s1512_s10 = scalar_lea.hbm %s1659_s4, %s904_s3 }
  0x67   : > { %569 = vmatprep.subr.bf16.mxu0 %v1068_v25  ;;  %932 = vmatprep.subr.bf16.mxu1 %v1294_v3 }
  0x6a   : > { %570 = vmatpush1.bf16.msra.mxu0 %v1070_v26  ;;  %933 = vmatpush3.bf16.msra.mxu1 %v1071_v27 }
  0x6b   : > { %571 = vmatprep.subr.bf16.mxu0 %v1072_v28  ;;  %934 = vmatprep.subr.bf16.mxu1 %v1294_v3 }
  0x6e   : > { %572 = vmatpush1.bf16.msra.mxu0 %v1074_v29  ;;  %935 = vmatpush3.bf16.msra.mxu1 %v1075_v30 }
  0xd9   : > { %v354_v8 = vpop.xlane.xlu0 %353 }
  0xda   : > { %v356_v9 = vmul.f32 0.0078125, %v354_v8 }
  0xdc   : > { %v357_v10 = vsub.f32 %v350_v0, %v356_v9 }
  0xde   : > { %v358_v11 = vmul.f32 %v357_v10, %v357_v10 }
  0xe0   : > { %359 = vadd.xlane.f32.xlu0 %v358_v11 }
 0x169   : > { %v360_v31 = vpop.xlane.xlu0 %359 }
 0x16a   : > { %v361_v32 = vmul.f32 0.0078125, %v360_v31 }
 0x16c   : > { %v362_v33 = vadd.f32 1e-05, %v361_v32 }
 0x16e   : > { %1076 = vrsqrt.f32 %v362_v33 }
 0x17b   : > { %v1077_v34 = vpop.eup %1076 }
 0x17c   : > { %v364_v36 = vmul.f32 %v1077_v34, %v357_v10 }
 0x17e   : > { %v371_v38 = vmul.f32 %v874_v35, %v364_v36 }
 0x180   : > { %v378_v39 = vadd.f32 %v875_v37, %v371_v38 }
 0x182   : > { %v379_v40 = vpack.c.bf16 %v378_v39, %v378_v39 }
 0x184   : > { %590 = vmatmul.mubr.bf16.vlgmr.msra.gmra.mxu0 %v379_v40  ;;  %937 = vmatmul.mubr.bf16.vlgmr.msra.gmra.mxu1 %v379_v40 }
 0x244   : > { %v591_v50 = vpop.f32.mrf.mxu0  ;;  %v632_v51 = vpop.f32.mrf.mxu1 }
 0x245   : > { %v592_v52 = vadd.f32 %v591_v50, %v417_v47  ;;  %v633_v53 = vadd.f32 %v632_v51, %v425_v48 }
 0x246   : > { %v593_v54 = vpop.f32.mrf.mxu0  ;;  %v938_v55 = vpop.f32.mrf.mxu1 }
 0x247   : > { %v638_v56 = vpack.c.bf16 %v592_v52, %v592_v52  ;;  %v642_v57 = vpack.c.bf16 %v633_v53, %v633_v53  ;;  %v594_v58 = vadd.f32 %v593_v54, %v421_v49 }
 0x248   : > { %v595_v59 = vpop.f32.mrf.mxu0  ;;  %v635_v60 = vpop.f32.mrf.mxu1 }
 0x249   : > { %639 = vst [vmem:[%s334_s21] sm:$0xf] %v638_v56  ;;  %643 = vst [vmem:[%s348_s16] sm:$0xf] %v642_v57  ;;  %v640_v61 = vpack.c.bf16 %v594_v58, %v594_v58  ;;  %s1136_s21 = sshll.u32 %s1297_s13, 4  ;;  %s1137_s21 = int_to_ptr.vmem [resolvable:$false] %s1136_s21 }
 0x24a   : > { %v596_v62 = vpop.f32.mrf.mxu0  ;;  %v939_v63 = vpop.f32.mrf.mxu1  ;;  %s1138_s16 = scalar_lea.vmem %s1137_s21, 128  ;;  %p1139_p3 = scmp.lt.s32.totalorder %s1500_s23, %s1137_s21 }
 0x24b   : > { %p1140_p5 = scmp.lt.s32.totalorder %s1138_s16, %s1132_s0 }
 0x24d   : > { %p1141_p2 = por %p1140_p5, %p1139_p3 }
 0x24f   : > { %p1142_p6 = pnand %p1141_p2, %p1135_p13 }
 0x251   : > { %1145 = shalt.err (!%p1142_p6)
}
 0x252   : > { %s1146_s3 = scalar_lea.hbm %s1498_s11, 64  ;;  %s1150_s14 = scalar_lea.hbm %s1656_s5, 256 }
 0x253   : > { %p1147_p7 = scmp.ne.s32.totalorder %s1498_s11, %s1146_s3  ;;  %p1151_p0 = scmp.lt.s32.totalorder %s1498_s11, %s1656_s5 }
 0x254   : > { %p1152_p1 = scmp.lt.s32.totalorder %s1150_s14, %s1146_s3 }
 0x255   : > { %p1148_p9 = pnand %p1147_p7, %p1426_p12 }
 0x256   : > { %p1153_p10 = por %p1152_p1, %p1151_p0 }
 0x257   : > { %p1149_p11 = pneg %p1148_p9 }
 0x259   : > { %p1154_p4 = pnand %p1153_p10, %p1149_p11 }
 0x25b   : > { %1157 = shalt.err (!%p1154_p4)
}
 0x25c   : > { %946 = dma.vmem_to_hbm [thread:$0]  (%p1426_p12), %s1500_s23, 64, %s1498_s11, %s645_s28  }
 0x25d   : > { %s1660_s0 = scalar_lea.vmem [#allocation8], %s1486_s20  ;;  %s1661_s21 = sand.u32 1, %s1381_s9  }
 0x25e   : > { %641 = vst [vmem:[%s1660_s0] sm:$0xf] %v640_v61  ;;  %s1541_s16 = scalar_lea.sflag [#allocation9], %s1661_s21  ;;  %s1158_s3 = scalar_lea.vmem %s1507_s7, 64 }
 0x25f   : > { %p1159_p8 = scmp.ne.s32.totalorder %s1507_s7, %s1158_s3  ;;  %s1298_s6 = smov [#allocation8]  }
 0x260   : > { %s1162_s17 = sshll.u32 %s1298_s6, 4  ;;  %s1163_s17 = int_to_ptr.vmem [resolvable:$false] %s1162_s17 }
 0x261   : > { %p1160_p13 = pnand %p1159_p8, %p1426_p12  ;;  %s1164_s14 = scalar_lea.vmem %s1163_s17, 128 }
 0x262   : > { %p1165_p5 = scmp.lt.s32.totalorder %s1507_s7, %s1163_s17  ;;  %p1166_p2 = scmp.lt.s32.totalorder %s1164_s14, %s1158_s3 }
 0x263   : > { %p1161_p3 = pneg %p1160_p13 }
 0x264   : > { %p1167_p6 = por %p1166_p2, %p1165_p5 }
 0x266   : > { %p1168_p7 = pnand %p1167_p6, %p1161_p3 }
 0x268   : > { %1171 = shalt.err (!%p1168_p7)
}
 0x269   : > { %s1172_s9 = scalar_lea.hbm %s1505_s19, 64  ;;  %s1176_s28 = scalar_lea.hbm %s1658_s18, 256 }
 0x26a   : > { %p1173_p9 = scmp.ne.s32.totalorder %s1505_s19, %s1172_s9  ;;  %p1177_p1 = scmp.lt.s32.totalorder %s1505_s19, %s1658_s18 }
 0x26b   : > { %p1178_p10 = scmp.lt.s32.totalorder %s1176_s28, %s1172_s9 }
 0x26c   : > { %p1174_p11 = pnand %p1173_p9, %p1426_p12 }
 0x26d   : > { %p1179_p4 = por %p1178_p10, %p1177_p1 }
 0x26e   : > { %p1175_p0 = pneg %p1174_p11 }
 0x270   : > { %p1180_p8 = pnand %p1179_p4, %p1175_p0 }
 0x272   : > { %1183 = shalt.err (!%p1180_p8)
}
 0x273   : > { %947 = dma.vmem_to_hbm [thread:$0]  (%p1426_p12), %s1507_s7, 64, %s1505_s19, %s1541_s16  }
 0x274   : > { %s1184_s13 = scalar_lea.vmem %s1514_s15, 64  ;;  %s1299_s0 = smov [#allocation10]  }
 0x275   : > { %p1185_p13 = scmp.ne.s32.totalorder %s1514_s15, %s1184_s13  ;;  %s1188_s21 = sshll.u32 %s1299_s0, 4  ;;  %s1189_s21 = int_to_ptr.vmem [resolvable:$false] %s1188_s21 }
 0x276   : > { %s1190_s3 = scalar_lea.vmem %s1189_s21, 128  ;;  %p1191_p2 = scmp.lt.s32.totalorder %s1514_s15, %s1189_s21 }
 0x277   : > { %p1186_p3 = pnand %p1185_p13, %p1426_p12  ;;  %p1192_p6 = scmp.lt.s32.totalorder %s1190_s3, %s1184_s13 }
 0x279   : > { %p1187_p5 = pneg %p1186_p3  ;;  %p1193_p7 = por %p1192_p6, %p1191_p2 }
 0x27b   : > { %p1194_p9 = pnand %p1193_p7, %p1187_p5 }
 0x27d   : > { %1197 = shalt.err (!%p1194_p9)
}
 0x27e   : > { %s1198_s6 = scalar_lea.hbm %s1512_s10, 64  ;;  %s1202_s17 = scalar_lea.hbm %s1659_s4, 256 }
 0x27f   : > { %p1199_p11 = scmp.ne.s32.totalorder %s1512_s10, %s1198_s6  ;;  %p1203_p10 = scmp.lt.s32.totalorder %s1512_s10, %s1659_s4 }
 0x280   : > { %p1204_p4 = scmp.lt.s32.totalorder %s1202_s17, %s1198_s6 }
 0x281   : > { %p1200_p0 = pnand %p1199_p11, %p1426_p12 }
 0x282   : > { %p1205_p8 = por %p1204_p4, %p1203_p10 }
 0x283   : > { %p1201_p1 = pneg %p1200_p0 }
 0x285   : > { %p1206_p13 = pnand %p1205_p8, %p1201_p1 }
 0x287   : > { %1209 = shalt.err (!%p1206_p13)
}
 0x288   : > { %948 = dma.vmem_to_hbm [thread:$0]  (%p1426_p12), %s1514_s15, 64, %s1512_s10, %s1541_s16  }
 0x289 PF: > { %s1662_s20 = sld [smem:[#allocation15_spill]]  ;;  %p973_p3 = scmp.ge.s32.totalorder %s1288_s8, 2 }
 0x28a   : > { %s1663_s23 = sld [smem:[#allocation16_spill]] }
 0x28f   : > { %s712_s28 = sand.u32 1, %s1662_s20  }
 0x290   : > { %p1664_p5 = scmp.ne.s32.totalorder %s1663_s23, 0  ;;  %s713_s11 = scalar_lea.sflag [#allocation4], %s712_s28 }
 0x292   : > { %p961_p2 = pnand %p973_p3, %p1664_p5 }
 0x294   : > { %p962_p6 = pneg %p961_p2 }
 0x296   : > { %1251 = dma.done.wait (%p962_p6), %s713_s11, 64  }
 0x297   : > { %1253 = vsyncadd (%p962_p6), %s713_s11, 4294967232  ;;  %s1665_s27 = sadd.s32 4294967294, %s1288_s8  }
 0x298   : > { %s721_s13 = sand.u32 1, %s1665_s27  }
 0x299   : > { %s722_s12 = scalar_lea.sflag [#allocation9], %s721_s13 }
 0x29a   : > { %1255 = dma.done.wait (%p962_p6), %s722_s12, 128  }
 0x29b   : > { %1257 = vsyncadd (%p962_p6), %s722_s12, 4294967168  ;;  %s28_s8 = sadd.s32 1, %s1288_s8   ;;  %s1666_s10 = smov %s1443_s24 }
 0x29c   : > { %p25_p12 = scmp.ge.s32.totalorder %s28_s8, 6   ;;  %s1667_s15 = sld [smem:[#allocation17_spill]] }
 0x29d   : > { %s1668_s24 = smov %s1264_s25  ;;  %s1669_s25 = smov %s1268_s26 }
 0x29e   : > { %s1670_s26 = smov %s1666_s10  ;;  %s1671_s27 = smov %s1280_s29 }
 0x29f   : > { %s1672_s28 = smov %s1284_s30  ;;  %s1674_s30 = smov %s1680_s22 }
 0x2a0   :  { %27 = sbr.rel (!%p25_p12) target bundleno = 17 (0x11), region = 121 }
 0x2a2   : > { %s1673_s29 = smov %s1667_s15 }
 0x2a5   :  { %736 = vsyncpa [#allocation3], 1 }
 0x2a6   :  { %738 = vsyncpa [#allocation3 + $0x1], 1 }
 0x2a7   :  { %739 = vsyncpa [#allocation6], 1 }
 0x2a8   :  { %740 = vsyncpa [#allocation4], 1 }
 0x2a9   :  { %742 = vsyncpa [#allocation4 + $0x1], 1 }
 0x2aa   :  { %743 = vsyncpa [#allocation9], 1 }
 0x2ab   :  { %745 = vsyncpa [#allocation9 + $0x1], 1 }

</bundles_post_ra>
